<compile_context>
chip_gen: v7x
topology: tpu7x:2x2x1
jax: 0.10.0
libtpu: 0.0.40
codegen_flags: <defaults>
</compile_context>

<pallas_src>
import functools

import numpy as np
import jax
import jax.numpy as jnp
from jax.experimental import pallas as pl
from jax.experimental.pallas import tpu as pltpu

N_TERMS = 2
LANE = 128
CHAN = 8  # x, y, z + 5 zero channels: full-sublane tiles and K=8 MXU contraction


def _score_kernel(w_ref, rows_ref, cols_ref, mrow_ref, mcol_ref, out_ref,
                  pair_acc, harm_acc):
    ib = pl.program_id(1)
    jb = pl.program_id(2)
    nb = pl.num_programs(1)

    # ---- per-pose accumulator init (first block of this pose) ----
    @pl.when(jnp.logical_and(ib == 0, jb == 0))
    def _init():
        pair_acc[...] = jnp.zeros_like(pair_acc)
        harm_acc[...] = jnp.zeros_like(harm_acc)

    # ---- upper-triangular blocks only; off-diagonal blocks counted twice ----
    @pl.when(jb >= ib)
    def _compute():
        ci = rows_ref[0]            # [T, 8]  row-block coords
        cj = cols_ref[0]            # [8, T]  col-block coords (transposed layout)
        mrow = mrow_ref[0]          # [T, 1]  1.0 = real atom, 0.0 = padding
        mcol = mcol_ref[0]          # [1, T]

        # Gram-matrix distances; the cross term runs on the MXU.
        g = jnp.dot(ci, cj, preferred_element_type=jnp.float32,
                    precision=jax.lax.Precision.HIGHEST)          # [T, T]
        r2i = jnp.sum(ci * ci, axis=1, keepdims=True)             # [T, 1]
        r2j = jnp.sum(cj * cj, axis=0, keepdims=True)             # [1, T]
        d2 = jnp.maximum(r2i + r2j - 2.0 * g, 0.0)                # clamp rounding
        prod = pl.reciprocal(d2 + 1.0) * mcol                     # EUP + col mask

        row_sums = jnp.sum(prod, axis=1, keepdims=True) * mrow    # [T, 1] row mask
        block_sum = jnp.sum(row_sums)
        weight = jnp.where(jb == ib, 1.0, 2.0)
        pair_acc[...] += weight * block_sum

        # Diagonal blocks: remove self-pairs and accumulate the O(n) harmonic term.
        @pl.when(jb == ib)
        def _diag():
            t = prod.shape[0]
            ri = jax.lax.broadcasted_iota(jnp.int32, (t, t), 0)
            cc = jax.lax.broadcasted_iota(jnp.int32, (t, t), 1)
            diag_vals = jnp.where(ri == cc, prod, 0.0)
            diag_sum = jnp.sum(
                jnp.sum(diag_vals, axis=1, keepdims=True) * mrow)
            pair_acc[...] = pair_acc[...] - diag_sum
            harm_acc[...] += jnp.sum(mrow * r2i)

    # ---- last block of this pose: apply term weights, emit output tile ----
    @pl.when(jnp.logical_and(ib == nb - 1, jb == nb - 1))
    def _finalize():
        w0 = w_ref[0]
        w1 = w_ref[1]
        row = jax.lax.broadcasted_iota(jnp.int32, (8, LANE), 0)
        lane = jax.lax.broadcasted_iota(jnp.int32, (8, LANE), 1)
        # accumulators are replicated-scalar tiles: every element holds the sum
        e_pair = (0.5 * w0) * pair_acc[...]
        e_harm = w1 * harm_acc[...]
        out_ref[0, :, :] = jnp.where(
            (row == 0) & (lane == 0), e_pair,
            jnp.where((row == 0) & (lane == 1), e_harm, jnp.float32(0.0)))


def _pick_tile(n_atoms):
    # 256x256 f32 block temporaries (~1 MiB live) fit comfortably in scoped
    # VMEM on v5e/v6e (32 MiB default) and v7x (64 MiB physical).
    return 128 if n_atoms <= 128 else 256


@functools.partial(jax.jit, static_argnames=("tile",))
def _whole_pose_score(weights, coords, tile):
    """coords: [n_poses, n_atoms, 3] f32 -> per-term scores [N_TERMS, n_poses]."""
    n_poses, n_atoms, _ = coords.shape
    n_pad = ((n_atoms + tile - 1) // tile) * tile
    nb = n_pad // tile

    # rows layout [P, n_pad, 8]: atoms on sublanes, xyz (+5 zero) channels on lanes
    rows = jnp.zeros((n_poses, n_pad, CHAN), jnp.float32)
    rows = rows.at[:, :n_atoms, :3].set(coords.astype(jnp.float32))
    cols = jnp.transpose(rows, (0, 2, 1))                          # [P, 8, n_pad]
    mrow = jnp.zeros((n_poses, n_pad, 1), jnp.float32)
    mrow = mrow.at[:, :n_atoms, :].set(1.0)
    mcol = jnp.transpose(mrow, (0, 2, 1))                          # [P, 1, n_pad]

    out = pl.pallas_call(
        _score_kernel,
        out_shape=jax.ShapeDtypeStruct((n_poses, 8, LANE), jnp.float32),
        grid=(n_poses, nb, nb),
        in_specs=[
            pl.BlockSpec(memory_space=pltpu.MemorySpace.SMEM),          # weights
            pl.BlockSpec((1, tile, CHAN), lambda p, i, j: (p, i, 0)),   # rows
            pl.BlockSpec((1, CHAN, tile), lambda p, i, j: (p, 0, j)),   # cols
            pl.BlockSpec((1, tile, 1), lambda p, i, j: (p, i, 0)),      # row mask
            pl.BlockSpec((1, 1, tile), lambda p, i, j: (p, 0, j)),      # col mask
        ],
        out_specs=pl.BlockSpec((1, 8, LANE), lambda p, i, j: (p, 0, 0)),
        scratch_shapes=[pltpu.VMEM((8, LANE), jnp.float32),   # pair accumulator
                        pltpu.VMEM((8, LANE), jnp.float32)],  # harmonic accumulator
        compiler_params=pltpu.CompilerParams(
            dimension_semantics=("parallel", "arbitrary", "arbitrary")),
    )(weights, rows, cols, mrow, mcol)
    # -> [n_terms, n_poses]   (matches tmol's per-term, per-pose score layout)
    return jnp.transpose(out[:, 0, :N_TERMS])


class CartesianSfxnNetwork:
    """JAX/Pallas port of tmol's CartesianSfxnNetwork."""

    def __init__(self, term_weights, full_coords, coord_mask=None):
        self.term_weights = jnp.asarray(term_weights, jnp.float32)
        self.full_coords = jnp.asarray(full_coords, jnp.float32)  # [P, A, 3]
        if coord_mask is None:
            coord_mask = np.ones(self.full_coords.shape[:-1], dtype=bool)
        self.coord_mask = np.asarray(coord_mask)
        self._masked_idx = jnp.asarray(
            np.nonzero(self.coord_mask.reshape(-1))[0], jnp.int32)
        # the optimizable parameter (torch: nn.Parameter(full_coords[mask]))
        self.masked_coords = self.full_coords.reshape(-1, 3)[self._masked_idx]
        self.count = 0

    def __call__(self):
        return self.forward()

    def forward(self):
        self.count += 1
        # full_coords[coord_mask] = masked_coords   (functional scatter)
        flat = self.full_coords.reshape(-1, 3)
        flat = flat.at[self._masked_idx].set(self.masked_coords)
        self.full_coords = flat.reshape(self.full_coords.shape)
        n_atoms = self.full_coords.shape[1]
        return _whole_pose_score(self.term_weights, self.full_coords,
                                 tile=_pick_tile(n_atoms))


def _ref_score(weights, coords):
    # pure-JAX reference of the synthetic scoring module
    n_atoms = coords.shape[1]
    d = coords[:, :, None, :] - coords[:, None, :, :]
    d2 = jnp.sum(d * d, axis=-1)
    eye = jnp.eye(n_atoms, dtype=jnp.float32)
    e_pair = 0.5 * jnp.sum((1.0 - eye) / (d2 + 1.0), axis=(1, 2))
    e_harm = jnp.sum(coords * coords, axis=(1, 2))
    return jnp.stack([weights[0] * e_pair, weights[1] * e_harm])


if __name__ == "__main__":
    key = jax.random.PRNGKey(0)
    k1, k2 = jax.random.split(key)
    weights = jnp.array([1.0, 0.25], jnp.float32)

    # --- case 1: tiny pose stack (single-block path) ---
    n_poses, n_atoms = 2, 16
    coords = jax.random.normal(k1, (n_poses, n_atoms, 3), jnp.float32) * 3.0
    coord_mask = np.zeros((n_poses, n_atoms), dtype=bool)
    coord_mask[:, ::2] = True   # every other atom is optimizable

    net = CartesianSfxnNetwork(weights, coords, coord_mask)
    scores = jax.block_until_ready(net())       # [n_terms, n_poses]
    expected = _ref_score(weights, net.full_coords)
    assert scores.shape == (N_TERMS, n_poses)
    assert net.count == 1
    np.testing.assert_allclose(np.asarray(scores), np.asarray(expected),
                               rtol=1e-3, atol=1e-3)

    # --- case 2: exercises the tiled + triangular multi-block path (2x2 blocks) ---
    coords2 = jax.random.normal(k2, (1, 300, 3), jnp.float32) * 4.0
    net2 = CartesianSfxnNetwork(weights, coords2)
    scores2 = jax.block_until_ready(net2())
    expected2 = _ref_score(weights, net2.full_coords)
    np.testing.assert_allclose(np.asarray(scores2), np.asarray(expected2),
                               rtol=1e-3, atol=1e-3)

    print("KERNEL_OK")
</pallas_src>

<mosaic_0001>
module attributes {stable_mosaic.version = 11 : i64} {
  func.func @_score_kernel(%arg0: i32, %arg1: i32, %arg2: i32, %arg3: memref<2xf32, #tpu.memory_space<smem>>, %arg4: memref<1x128x8xf32, #tpu.memory_space<vmem>>, %arg5: memref<1x8x128xf32, #tpu.memory_space<vmem>>, %arg6: memref<1x128x1xf32, #tpu.memory_space<vmem>>, %arg7: memref<1x1x128xf32, #tpu.memory_space<vmem>>, %arg8: memref<1x8x128xf32, #tpu.memory_space<vmem>>, %arg9: memref<8x128xf32, #tpu.memory_space<vmem>>, %arg10: memref<8x128xf32, #tpu.memory_space<vmem>>) attributes {dimension_semantics = [#tpu.dimension_semantics<parallel>, #tpu.dimension_semantics<arbitrary>, #tpu.dimension_semantics<arbitrary>], iteration_bounds = array<i64: 2, 1, 1>, scalar_prefetch = 0 : i64, scratch_operands = 2 : i64, tpu.core_type = #tpu.core_type<tc>, window_params = [{transform_indices = @transform_0, window_bounds = array<i64: 2>}, {transform_indices = @transform_1, window_bounds = array<i64: 1, 128, 8>}, {transform_indices = @transform_2, window_bounds = array<i64: 1, 8, 128>}, {transform_indices = @transform_3, window_bounds = array<i64: 1, 128, 1>}, {transform_indices = @transform_4, window_bounds = array<i64: 1, 1, 128>}, {transform_indices = @transform_5, window_bounds = array<i64: 1, 8, 128>}]} {
    %c0_i32 = arith.constant 0 : i32
    %0 = arith.cmpi eq, %arg1, %c0_i32 : i32
    %c0_i32_0 = arith.constant 0 : i32
    %1 = arith.cmpi eq, %arg2, %c0_i32_0 : i32
    %2 = arith.andi %0, %1 : i1
    %3 = arith.extui %2 : i1 to i32
    %c0_i32_1 = arith.constant 0 : i32
    %4 = arith.cmpi ne, %3, %c0_i32_1 : i32
    scf.if %4 {
      %cst = arith.constant 0.000000e+00 : f32
      %13 = vector.broadcast %cst : f32 to vector<8x128xf32>
      %c0 = arith.constant 0 : index
      %c0_6 = arith.constant 0 : index
      %14 = vector.load %arg9[%c0, %c0_6] : memref<8x128xf32, #tpu.memory_space<vmem>>, vector<8x128xf32>
      tpu.vector_store %arg9[%c0, %c0_6], %13 {strides = array<i32>} : memref<8x128xf32, #tpu.memory_space<vmem>>, vector<8x128xf32>,
      %cst_7 = arith.constant 0.000000e+00 : f32
      %15 = vector.broadcast %cst_7 : f32 to vector<8x128xf32>
      %c0_8 = arith.constant 0 : index
      %c0_9 = arith.constant 0 : index
      %16 = vector.load %arg10[%c0_8, %c0_9] : memref<8x128xf32, #tpu.memory_space<vmem>>, vector<8x128xf32>
      tpu.vector_store %arg10[%c0_8, %c0_9], %15 {strides = array<i32>} : memref<8x128xf32, #tpu.memory_space<vmem>>, vector<8x128xf32>,
    } else {
    }
    %5 = arith.cmpi sge, %arg2, %arg1 : i32
    %6 = arith.extui %5 : i1 to i32
    %c0_i32_2 = arith.constant 0 : i32
    %7 = arith.cmpi ne, %6, %c0_i32_2 : i32
    scf.if %7 {
      %c0 = arith.constant 0 : index
      %c0_6 = arith.constant 0 : index
      %c0_7 = arith.constant 0 : index
      %13 = vector.load %arg4[%c0, %c0_6, %c0_7] : memref<1x128x8xf32, #tpu.memory_space<vmem>>, vector<1x128x8xf32>
      %14 = vector.shape_cast %13 : vector<1x128x8xf32> to vector<128x8xf32>
      %c0_8 = arith.constant 0 : index
      %c0_9 = arith.constant 0 : index
      %c0_10 = arith.constant 0 : index
      %15 = vector.load %arg5[%c0_8, %c0_9, %c0_10] : memref<1x8x128xf32, #tpu.memory_space<vmem>>, vector<1x8x128xf32>
      %16 = vector.shape_cast %15 : vector<1x8x128xf32> to vector<8x128xf32>
      %c0_11 = arith.constant 0 : index
      %c0_12 = arith.constant 0 : index
      %c0_13 = arith.constant 0 : index
      %17 = vector.load %arg6[%c0_11, %c0_12, %c0_13] : memref<1x128x1xf32, #tpu.memory_space<vmem>>, vector<1x128x1xf32>
      %18 = vector.shape_cast %17 : vector<1x128x1xf32> to vector<128x1xf32>
      %c0_14 = arith.constant 0 : index
      %c0_15 = arith.constant 0 : index
      %c0_16 = arith.constant 0 : index
      %19 = vector.load %arg7[%c0_14, %c0_15, %c0_16] : memref<1x1x128xf32, #tpu.memory_space<vmem>>, vector<1x1x128xf32>
      %20 = vector.shape_cast %19 : vector<1x1x128xf32> to vector<1x128xf32>
      %cst = arith.constant dense<0.000000e+00> : vector<128x128xf32>
      %21 = tpu.matmul %14, %16, %cst {dimension_numbers = #tpu.dot_dimension_numbers<[1], [0], [0], [1], [0, 0, 1, 1], [], []>, precision = #tpu.contract_precision<fp32>} : vector<128x8xf32>, vector<8x128xf32>, vector<128x128xf32> -> vector<128x128xf32>
      %22 = arith.mulf %14, %14 : vector<128x8xf32>
      %cst_17 = arith.constant dense<0.000000e+00> : vector<128xf32>
      %23 = vector.multi_reduction <add>, %22, %cst_17 [1] : vector<128x8xf32> to vector<128xf32>
      %24 = vector.shape_cast %23 : vector<128xf32> to vector<128x1xf32>
      %25 = arith.mulf %16, %16 : vector<8x128xf32>
      %cst_18 = arith.constant dense<0.000000e+00> : vector<128xf32>
      %26 = vector.multi_reduction <add>, %25, %cst_18 [0] : vector<8x128xf32> to vector<128xf32>
      %27 = vector.shape_cast %26 : vector<128xf32> to vector<1x128xf32>
      %28 = vector.broadcast %24 : vector<128x1xf32> to vector<128x128xf32>
      %29 = vector.broadcast %27 : vector<1x128xf32> to vector<128x128xf32>
      %30 = arith.addf %28, %29 : vector<128x128xf32>
      %cst_19 = arith.constant 2.000000e+00 : f32
      %31 = vector.broadcast %cst_19 : f32 to vector<128x128xf32>
      %32 = arith.mulf %31, %21 : vector<128x128xf32>
      %33 = arith.subf %30, %32 : vector<128x128xf32>
      %cst_20 = arith.constant 0.000000e+00 : f32
      %34 = vector.broadcast %cst_20 : f32 to vector<128x128xf32>
      %35 = arith.maximumf %33, %34 : vector<128x128xf32>
      %cst_21 = arith.constant 1.000000e+00 : f32
      %36 = vector.broadcast %cst_21 : f32 to vector<128x128xf32>
      %37 = arith.addf %35, %36 : vector<128x128xf32>
      %38 = tpu.reciprocal %37 : vector<128x128xf32> -> vector<128x128xf32>
      %39 = vector.broadcast %20 : vector<1x128xf32> to vector<128x128xf32>
      %40 = arith.mulf %38, %39 : vector<128x128xf32>
      %cst_22 = arith.constant dense<0.000000e+00> : vector<128xf32>
      %41 = vector.multi_reduction <add>, %40, %cst_22 [1] : vector<128x128xf32> to vector<128xf32>
      %42 = vector.shape_cast %41 : vector<128xf32> to vector<128x1xf32>
      %43 = arith.mulf %42, %18 : vector<128x1xf32>
      %44 = vector.shape_cast %43 : vector<128x1xf32> to vector<1x128x1xf32>
      %cst_23 = arith.constant dense<0.000000e+00> : vector<1xf32>
      %45 = vector.multi_reduction <add>, %44, %cst_23 [1, 2] : vector<1x128x1xf32> to vector<1xf32>
      %46 = vector.shape_cast %45 : vector<1xf32> to vector<1x1x1xf32>
      %47 = vector.extract %46[0, 0, 0] : f32 from vector<1x1x1xf32>
      %48 = arith.cmpi eq, %arg2, %arg1 : i32
      %cst_24 = arith.constant 1.000000e+00 : f32
      %cst_25 = arith.constant 2.000000e+00 : f32
      %49 = arith.select %48, %cst_24, %cst_25 : f32
      %c0_26 = arith.constant 0 : index
      %c0_27 = arith.constant 0 : index
      %50 = vector.load %arg9[%c0_26, %c0_27] : memref<8x128xf32, #tpu.memory_space<vmem>>, vector<8x128xf32>
      %51 = arith.mulf %49, %47 : f32
      %52 = vector.broadcast %51 : f32 to vector<8x128xf32>
      %53 = arith.addf %50, %52 : vector<8x128xf32>
      %c0_28 = arith.constant 0 : index
      %c0_29 = arith.constant 0 : index
      %54 = vector.load %arg9[%c0_28, %c0_29] : memref<8x128xf32, #tpu.memory_space<vmem>>, vector<8x128xf32>
      tpu.vector_store %arg9[%c0_28, %c0_29], %53 {strides = array<i32>} : memref<8x128xf32, #tpu.memory_space<vmem>>, vector<8x128xf32>,
      %55 = arith.cmpi eq, %arg2, %arg1 : i32
      %56 = arith.extui %55 : i1 to i32
      %c0_i32_30 = arith.constant 0 : i32
      %57 = arith.cmpi ne, %56, %c0_i32_30 : i32
      scf.if %57 {
        %58 = tpu.iota {dimensions = array<i32: 0>} : vector<128x128xi32>
        %59 = tpu.iota {dimensions = array<i32: 1>} : vector<128x128xi32>
        %60 = arith.cmpi eq, %58, %59 : vector<128x128xi32>
        %cst_31 = arith.constant 0.000000e+00 : f32
        %61 = vector.broadcast %cst_31 : f32 to vector<128x128xf32>
        %62 = arith.select %60, %40, %61 : vector<128x128xi1>, vector<128x128xf32>
        %cst_32 = arith.constant dense<0.000000e+00> : vector<128xf32>
        %63 = vector.multi_reduction <add>, %62, %cst_32 [1] : vector<128x128xf32> to vector<128xf32>
        %64 = vector.shape_cast %63 : vector<128xf32> to vector<128x1xf32>
        %65 = arith.mulf %64, %18 : vector<128x1xf32>
        %66 = vector.shape_cast %65 : vector<128x1xf32> to vector<1x128x1xf32>
        %cst_33 = arith.constant dense<0.000000e+00> : vector<1xf32>
        %67 = vector.multi_reduction <add>, %66, %cst_33 [1, 2] : vector<1x128x1xf32> to vector<1xf32>
        %68 = vector.shape_cast %67 : vector<1xf32> to vector<1x1x1xf32>
        %69 = vector.extract %68[0, 0, 0] : f32 from vector<1x1x1xf32>
        %c0_34 = arith.constant 0 : index
        %c0_35 = arith.constant 0 : index
        %70 = vector.load %arg9[%c0_34, %c0_35] : memref<8x128xf32, #tpu.memory_space<vmem>>, vector<8x128xf32>
        %71 = vector.broadcast %69 : f32 to vector<8x128xf32>
        %72 = arith.subf %70, %71 : vector<8x128xf32>
        %c0_36 = arith.constant 0 : index
        %c0_37 = arith.constant 0 : index
        %73 = vector.load %arg9[%c0_36, %c0_37] : memref<8x128xf32, #tpu.memory_space<vmem>>, vector<8x128xf32>
        tpu.vector_store %arg9[%c0_36, %c0_37], %72 {strides = array<i32>} : memref<8x128xf32, #tpu.memory_space<vmem>>, vector<8x128xf32>,
        %c0_38 = arith.constant 0 : index
        %c0_39 = arith.constant 0 : index
        %74 = vector.load %arg10[%c0_38, %c0_39] : memref<8x128xf32, #tpu.memory_space<vmem>>, vector<8x128xf32>
        %75 = arith.mulf %18, %24 : vector<128x1xf32>
        %76 = vector.shape_cast %75 : vector<128x1xf32> to vector<1x128x1xf32>
        %cst_40 = arith.constant dense<0.000000e+00> : vector<1xf32>
        %77 = vector.multi_reduction <add>, %76, %cst_40 [1, 2] : vector<1x128x1xf32> to vector<1xf32>
        %78 = vector.shape_cast %77 : vector<1xf32> to vector<1x1x1xf32>
        %79 = vector.extract %78[0, 0, 0] : f32 from vector<1x1x1xf32>
        %80 = vector.broadcast %79 : f32 to vector<8x128xf32>
        %81 = arith.addf %74, %80 : vector<8x128xf32>
        %c0_41 = arith.constant 0 : index
        %c0_42 = arith.constant 0 : index
        %82 = vector.load %arg10[%c0_41, %c0_42] : memref<8x128xf32, #tpu.memory_space<vmem>>, vector<8x128xf32>
        tpu.vector_store %arg10[%c0_41, %c0_42], %81 {strides = array<i32>} : memref<8x128xf32, #tpu.memory_space<vmem>>, vector<8x128xf32>,
      } else {
      }
    } else {
    }
    %c0_i32_3 = arith.constant 0 : i32
    %8 = arith.cmpi eq, %arg1, %c0_i32_3 : i32
    %c0_i32_4 = arith.constant 0 : i32
    %9 = arith.cmpi eq, %arg2, %c0_i32_4 : i32
    %10 = arith.andi %8, %9 : i1
    %11 = arith.extui %10 : i1 to i32
    %c0_i32_5 = arith.constant 0 : i32
    %12 = arith.cmpi ne, %11, %c0_i32_5 : i32
    scf.if %12 {
      %c0 = arith.constant 0 : index
      %13 = memref.load %arg3[%c0] : memref<2xf32, #tpu.memory_space<smem>>
      %c1 = arith.constant 1 : index
      %14 = memref.load %arg3[%c1] : memref<2xf32, #tpu.memory_space<smem>>
      %15 = tpu.iota {dimensions = array<i32: 0>} : vector<8x128xi32>
      %16 = tpu.iota {dimensions = array<i32: 1>} : vector<8x128xi32>
      %cst = arith.constant 5.000000e-01 : f32
      %17 = arith.mulf %cst, %13 : f32
      %c0_6 = arith.constant 0 : index
      %c0_7 = arith.constant 0 : index
      %18 = vector.load %arg9[%c0_6, %c0_7] : memref<8x128xf32, #tpu.memory_space<vmem>>, vector<8x128xf32>
      %19 = vector.broadcast %17 : f32 to vector<8x128xf32>
      %20 = arith.mulf %19, %18 : vector<8x128xf32>
      %c0_8 = arith.constant 0 : index
      %c0_9 = arith.constant 0 : index
      %21 = vector.load %arg10[%c0_8, %c0_9] : memref<8x128xf32, #tpu.memory_space<vmem>>, vector<8x128xf32>
      %22 = vector.broadcast %14 : f32 to vector<8x128xf32>
      %23 = arith.mulf %22, %21 : vector<8x128xf32>
      %c0_i32_10 = arith.constant 0 : i32
      %24 = vector.broadcast %c0_i32_10 : i32 to vector<8x128xi32>
      %25 = arith.cmpi eq, %15, %24 : vector<8x128xi32>
      %c0_i32_11 = arith.constant 0 : i32
      %26 = vector.broadcast %c0_i32_11 : i32 to vector<8x128xi32>
      %27 = arith.cmpi eq, %16, %26 : vector<8x128xi32>
      %28 = arith.andi %25, %27 : vector<8x128xi1>
      %c0_i32_12 = arith.constant 0 : i32
      %29 = vector.broadcast %c0_i32_12 : i32 to vector<8x128xi32>
      %30 = arith.cmpi eq, %15, %29 : vector<8x128xi32>
      %c1_i32 = arith.constant 1 : i32
      %31 = vector.broadcast %c1_i32 : i32 to vector<8x128xi32>
      %32 = arith.cmpi eq, %16, %31 : vector<8x128xi32>
      %33 = arith.andi %30, %32 : vector<8x128xi1>
      %cst_13 = arith.constant 0.000000e+00 : f32
      %34 = vector.broadcast %cst_13 : f32 to vector<8x128xf32>
      %35 = arith.select %33, %23, %34 : vector<8x128xi1>, vector<8x128xf32>
      %36 = arith.select %28, %20, %35 : vector<8x128xi1>, vector<8x128xf32>
      %c0_14 = arith.constant 0 : index
      %c0_15 = arith.constant 0 : index
      %c0_16 = arith.constant 0 : index
      %37 = vector.load %arg8[%c0_14, %c0_15, %c0_16] : memref<1x8x128xf32, #tpu.memory_space<vmem>>, vector<1x8x128xf32>
      %38 = vector.shape_cast %37 : vector<1x8x128xf32> to vector<8x128xf32>
      %39 = vector.shape_cast %36 : vector<8x128xf32> to vector<1x8x128xf32>
      tpu.vector_store %arg8[%c0_14, %c0_15, %c0_16], %39 {strides = array<i32>} : memref<1x8x128xf32, #tpu.memory_space<vmem>>, vector<1x8x128xf32>,
    } else {
    }
    return
  }
  func.func @transform_0(%arg0: i32, %arg1: i32, %arg2: i32) -> i32 {
    %c0_i32 = arith.constant 0 : i32
    %c0_i32_0 = arith.constant 0 : i32
    return %c0_i32 : i32
  }
  func.func @transform_1(%arg0: i32, %arg1: i32, %arg2: i32) -> (i32, i32, i32) {
    %c0_i32 = arith.constant 0 : i32
    %c0_i32_0 = arith.constant 0 : i32
    return %arg0, %arg1, %c0_i32 : i32, i32, i32
  }
  func.func @transform_2(%arg0: i32, %arg1: i32, %arg2: i32) -> (i32, i32, i32) {
    %c0_i32 = arith.constant 0 : i32
    %c0_i32_0 = arith.constant 0 : i32
    return %arg0, %c0_i32, %arg2 : i32, i32, i32
  }
  func.func @transform_3(%arg0: i32, %arg1: i32, %arg2: i32) -> (i32, i32, i32) {
    %c0_i32 = arith.constant 0 : i32
    %c0_i32_0 = arith.constant 0 : i32
    return %arg0, %arg1, %c0_i32 : i32, i32, i32
  }
  func.func @transform_4(%arg0: i32, %arg1: i32, %arg2: i32) -> (i32, i32, i32) {
    %c0_i32 = arith.constant 0 : i32
    %c0_i32_0 = arith.constant 0 : i32
    return %arg0, %c0_i32, %arg2 : i32, i32, i32
  }
  func.func @transform_5(%arg0: i32, %arg1: i32, %arg2: i32) -> (i32, i32, i32) {
    %c0_i32 = arith.constant 0 : i32
    %c0_i32_0 = arith.constant 0 : i32
    %c0_i32_1 = arith.constant 0 : i32
    return %arg0, %c0_i32, %c0_i32_0 : i32, i32, i32
  }
}

</mosaic_0001>

<bundles_post_ra>
// kernel: _whole_pose_score.1
= control target key start
LH: loop header
LB: loop body
LE: loop exit
PB: predicated region body
PF: predicated region fallthrough
CT: control target
= control target key end

     0   :  { %10 = vsyncpa [#allocation5], 0  ;;  %s2693_s18 = smov 0   ;;  %s2695_s19 = smov 0   ;;  %s3419_s0 = inlined_call_operand.vmem [shape: f32[2], index: 0, kind: input, shape index: {}]   ;;  %s3420_s1 = inlined_call_operand.vmem [shape: f32[2,128,8], index: 1, kind: input, shape index: {}]   ;;  %s3421_s2 = inlined_call_operand.vmem [shape: f32[2,8,128], index: 2, kind: input, shape index: {}]   ;;  %s3422_s3 = inlined_call_operand.vmem [shape: f32[2,128,1], index: 3, kind: input, shape index: {}]   ;;  %s3423_s4 = inlined_call_operand.vmem [shape: f32[2,1,128], index: 4, kind: input, shape index: {}]   ;;  %s3424_s5 = inlined_call_operand.vmem [shape: f32[2,8,128], index: 5, kind: output, shape index: {}]  }
   0x1   :  { %s2697_s20 = smov 0  }
   0x2 LB: > { %s2189_s21 = sadd.s32 4294967295, %s2660_s20   ;;  %s35_s22 = sadd.s32 1, %s2656_s19  ;;  %s2660_s20 = sphi %s2697_s20, %s16_s20   ;;  %s2656_s19 = sphi %s2695_s19, %s3437_s19   ;;  %s2652_s18 = sphi %s2693_s18, %s3436_s18  }
   0x3   : > { %p37_p0 = scmp.ge.s32.totalorder %s35_s22, 2  ;;  %p2191_p1 = scmp.ge.s32.totalorder %s2660_s20, 1 }
   0x4   : > { %p199_p2 = scmp.lt.s32.totalorder %s2660_s20, 3  ;;  %p2718_p4 = scmp.eq.s32.totalorder %s2189_s21, 0 }
   0x5   : > { %s3439_s22 = smov (%p37_p0, %s35_s22), 0  ;;  %s212_s27 = sshll.u32 %s3419_s0, 4  ;;  %s213_s27 = int_to_ptr.vmem [resolvable:$true] %s212_s27 }
   0x6   : > { %p2714_p3 = pnand %p2191_p1, %p199_p2  ;;  %s2619_s28 = scalar_lea.vmem %s213_s27, 16 }
   0x7   : > { %p2620_p7 = scmp.ne.s32.totalorder %s213_s27, %s2619_s28  ;;  %p2627_p11 = scmp.lt.s32.totalorder %s213_s27, %s213_s27 }
   0x8   : > { %p2556_p5 = pneg %p2714_p3  ;;  %p2628_p12 = scmp.lt.s32.totalorder %s2619_s28, %s2619_s28 }
   0xa   : > { %p2557_p6 = pnand %p2718_p4, %p2556_p5  ;;  %p2629_p13 = por %p2628_p12, %p2627_p11 }
   0xc   : > { %p2621_p8 = pneg %p2557_p6 }
   0xe   : > { %p2622_p9 = pnand %p2621_p8, %p2620_p7 }
  0x10   : > { %p2623_p10 = pneg %p2622_p9 }
  0x12   : > { %p2630_p0 = pnand %p2629_p13, %p2623_p10 }
  0x14   : > { %2633 = shalt.err (!%p2630_p0)
}
  0x15   : > { %s2662_s29 = smov [#allocation4]   ;;  %270 = sbr.rel (%p2714_p3) target bundleno = 771 (0x303), region = 40 }
  0x16   : > { %2559 = dma.vmem_to_smem (!%p2557_p6), %s213_s27, 16, %s2662_s29, [#allocation5]  }
  0x1c   : > { %2647 = dma.done.wait (%p2718_p4), [#allocation5], 16  }
  0x1d   : > { %2649 = vsyncadd (%p2718_p4), [#allocation5], 4294967280 }
  0x1e   : > { %276 = sfence }
  0x1f   : > { %p325_p1 = scmp.lt.s32.totalorder %s2652_s18, 1  ;;  %vm407_vm0 = vcmask 64512   ;;  %vm1784_vm1 = vcmask 7168   ;;  %s2040_s23 = sld [smem:[#allocation4]] }
  0x20   : > { %s2203_s24 = sld [smem:[#allocation4 + $0x1]] }
  0x21   : > { %s3441_s18 = smov (!%p325_p1, %s2652_s18), 1 }
  0x22   : > { %s2206_s30 = sshll.u32 %s3441_s18, 7  ;;  %s2198_s6 = sshll.u32 %s3441_s18, 3 }
  0x23   : > { %s2746_s9 = scalar_lea.vmem %s3420_s1, %s2206_s30  ;;  %s340_s12 = scalar_lea.vmem %s3421_s2, %s2198_s6 }
  0x24   : > { %v2753_v0 = vld [vmem:[%s340_s12] sm:$0xff]  ;;  %v2759_v2 = vld [vmem:[%s2746_s9 + $0x8] sm:$0xff]  ;;  %v2769_v6 = vld [vmem:[%s2746_s9 + $0x10] sm:$0xff]  ;;  %s3084_s15 = scalar_lea.vmem %s3422_s3, %s2206_s30  ;;  %s356_s21 = scalar_lea.vmem %s3423_s4, %s3441_s18 }
  0x25   : > { %3430 = vst [vmem:[#allocation7_spill] sm:$0xff] %v2753_v0  ;;  %v2756_v1 = vld [vmem:[%s2746_s9] sm:$0xff]  ;;  %v2762_v3 = vand.u32 4294901760, %v2753_v0  ;;  %v412_v5 = vsel %vm407_vm0, %v2759_v2, 0  ;;  %v415_v9 = vsel %vm407_vm0, %v2769_v6, 0  ;;  %v2778_v10 = vld [vmem:[%s2746_s9 + $0x18] sm:$0xff]  ;;  %s360_s7 = scalar_lea.vmem %s3424_s5, %s2198_s6 }
  0x26   : > { %v409_v4 = vsel %vm407_vm0, %v2756_v1, 0  ;;  %v2773_v8 = vand.u32 4294901760, %v412_v5  ;;  %v2781_v11 = vld [vmem:[%s2746_s9 + $0x20] sm:$0xff]  ;;  %v2789_v13 = vand.u32 4294901760, %v415_v9  ;;  %v418_v14 = vsel %vm407_vm0, %v2778_v10, 0  ;;  %v2794_v15 = vld [vmem:[%s2746_s9 + $0x28] sm:$0xff] }
  0x27   : > { %v2771_v7 = vand.u32 4294901760, %v409_v4  ;;  %2388 = vmatprep.subr.mxu0 %v2762_v3  ;;  %2310 = vmatprep.subr.mxu1 %v2762_v3  ;;  %v2787_v12 = vsub.f32 %v2753_v0, %v2762_v3  ;;  %v2804_v18 = vand.u32 4294901760, %v418_v14  ;;  %v421_v19 = vsel %vm407_vm0, %v2781_v11, 0  ;;  %v2832_v34 = vld [vmem:[%s2746_s9 + $0x30] sm:$0xff]  ;;  %v2837_v38 = vld [vmem:[%s2746_s9 + $0x38] sm:$0xff]  ;;  %v2844_v43 = vld [vmem:[%s2746_s9 + $0x40] sm:$0xff] }
  0x28   : > { %2389 = vmatpush3.msra.mxu0 %v2762_v3  ;;  %v2801_v17 = vsub.f32 %v412_v5, %v2773_v8  ;;  %2311 = vmatpush3.msra.mxu1 %v2762_v3  ;;  %v2810_v21 = vsub.f32 %v415_v9, %v2789_v13  ;;  %v2812_v22 = vand.u32 4294901760, %v421_v19  ;;  %v424_v26 = vsel %vm407_vm0, %v2794_v15, 0  ;;  %v2850_v47 = vld [vmem:[%s2746_s9 + $0x48] sm:$0xff]  ;;  %v2859_v51 = vld [vmem:[%s2746_s9 + $0x50] sm:$0xff]  ;;  %v2862_v52 = vld [vmem:[%s2746_s9 + $0x58] sm:$0xff]  ;;  %s2046_s26 = smul.f32 0.5, %s2040_s23 }
  0x29   : > { %v2798_v16 = vsub.f32 %v409_v4, %v2771_v7  ;;  %v685_v20 = vand.u32 4294901760, %v2787_v12  ;;  %v2817_v25 = vsub.f32 %v418_v14, %v2804_v18  ;;  %v2829_v33 = vand.u32 4294901760, %v424_v26  ;;  %v2881_v62 = vld [vmem:[%s2746_s9 + $0x60] sm:$0xff] }
  0x2a   : > { %v534_v24 = vand.u32 4294901760, %v2801_v17  ;;  %v544_v28 = vand.u32 4294901760, %v2810_v21  ;;  %v2824_v29 = vsub.f32 %v421_v19, %v2812_v22  ;;  %v427_v46 = vsel %vm407_vm0, %v2832_v34, 0 }
  0x2b   : > { %v524_v23 = vand.u32 4294901760, %v2798_v16  ;;  %v686_v27 = vsub.f32 %v2787_v12, %v685_v20  ;;  %2414 = vmatprep.subr.mxu0 %v685_v20  ;;  %v554_v32 = vand.u32 4294901760, %v2817_v25  ;;  %v2841_v42 = vsub.f32 %v424_v26, %v2829_v33 }
  0x2c   : > { %v535_v31 = vsub.f32 %v2801_v17, %v534_v24  ;;  %v545_v36 = vsub.f32 %v2810_v21, %v544_v28  ;;  %v564_v37 = vand.u32 4294901760, %v2824_v29  ;;  %v2854_v49 = vand.u32 4294901760, %v427_v46 }
  0x2d   : > { %2390 = vmatprep.mubr.f32.mxu0 %v524_v23  ;;  %v525_v30 = vsub.f32 %v2798_v16, %v524_v23  ;;  %v687_v35 = vand.u32 4294901760, %v686_v27  ;;  %v555_v41 = vsub.f32 %v2817_v25, %v554_v32  ;;  %v574_v48 = vand.u32 4294901760, %v2841_v42  ;;  %v2900_v23 = vld [vmem:[%s2746_s9 + $0x68] sm:$0xff] }
  0x2e   : > { %2391 = vmatmul.mubr.f32.vlgmr.msra.gmra.mrb[0].mxu0 %v534_v24  ;;  %v536_v40 = vand.u32 4294901760, %v535_v31  ;;  %v546_v44 = vand.u32 4294901760, %v545_v36  ;;  %v565_v45 = vsub.f32 %v2824_v29, %v564_v37  ;;  %v430_v50 = vsel %vm407_vm0, %v2837_v38, 0 }
  0x2f   : > { %v526_v39 = vand.u32 4294901760, %v525_v30  ;;  %2393 = vmatprep.mubr.f32.mxu0 %v544_v28  ;;  %2415 = vmatpush3.msra.mxu0 %v685_v20  ;;  %v2866_v53 = vmul.f32 %v2756_v1, %v2756_v1  ;;  %v556_v54 = vand.u32 4294901760, %v555_v41  ;;  %v2868_v56 = vand.u32 4294901760, %v430_v50  ;;  %v2925_v41 = vld [vmem:[%s2746_s9 + $0x70] sm:$0xff] }
  0x30   : > { %2336 = vmatprep.subr.mxu1 %v687_v35  ;;  %2440 = vmatprep.subr.mxu0 %v2762_v3  ;;  %v566_v55 = vand.u32 4294901760, %v565_v45  ;;  %v433_v57 = vsel %vm407_vm0, %v2844_v43, 0  ;;  %v2873_v58 = vsub.f32 %v427_v46, %v2854_v49  ;;  %v575_v59 = vsub.f32 %v2841_v42, %v574_v48 }
  0x31   : > { %2312 = vmatprep.mubr.f32.mxu1 %v526_v39  ;;  %v2876_v60 = vand.u32 4294901760, %v433_v57  ;;  %v436_v61 = vsel %vm407_vm0, %v2850_v47, 0  ;;  %v2884_v63 = vsub.f32 %v430_v50, %v2868_v56  ;;  %v439_v4 = vsel %vm407_vm0, %v2859_v51, 0 }
  0x32   : > { %2313 = vmatmul.mubr.f32.vlgmr.msra.gmra.mrb[0].mxu1 %v536_v40  ;;  %2394 = vmatmul.mubr.f32.gmra.mrb[2].mxu0 %v554_v32  ;;  %v2886_v1 = vand.u32 4294901760, %v436_v61  ;;  %v442_v5 = vsel %vm407_vm0, %v2862_v52, 0  ;;  %v584_v9 = vand.u32 4294901760, %v2873_v58  ;;  %v576_v14 = vand.u32 4294901760, %v575_v59  ;;  %v2937_v59 = vld [vmem:[%s2746_s9 + $0x78] sm:$0xff] }
  0x33   : > { %2337 = vmatpush3.msra.mxu1 %v687_v35  ;;  %2315 = vmatprep.mubr.f32.mxu1 %v546_v44  ;;  %v2895_v19 = vsub.f32 %v433_v57, %v2876_v60  ;;  %v2897_v20 = vand.u32 4294901760, %v439_v4  ;;  %v594_v24 = vand.u32 4294901760, %v2884_v63  ;;  %v2906_v27 = vand.u32 4294901760, %v442_v5 }
  0x34   : > { %2396 = vmatprep.mubr.f32.mxu0 %v564_v37  ;;  %2362 = vmatprep.subr.mxu1 %v2787_v12  ;;  %v2904_v26 = vsub.f32 %v436_v61, %v2886_v1  ;;  %v445_v28 = vsel %vm407_vm0, %v2881_v62, 0  ;;  %v585_v30 = vsub.f32 %v2873_v58, %v584_v9  ;;  %v448_v40 = vsel %vm407_vm0, %v2900_v23, 0 }
  0x35   : > { %v604_v31 = vand.u32 4294901760, %v2895_v19  ;;  %v2913_v32 = vsub.f32 %v439_v4, %v2897_v20  ;;  %v2915_v35 = vand.u32 4294901760, %v445_v28  ;;  %v595_v36 = vsub.f32 %v2884_v63, %v594_v24 }
  0x36   : > { %2316 = vmatmul.mubr.f32.gmra.mrb[2].mxu1 %v556_v54  ;;  %2397 = vmatmul.mubr.f32.gmra.mrb[4].mxu0 %v574_v48  ;;  %v614_v37 = vand.u32 4294901760, %v2904_v26  ;;  %v2920_v39 = vsub.f32 %v442_v5, %v2906_v27  ;;  %v586_v44 = vand.u32 4294901760, %v585_v30  ;;  %v2934_v57 = vand.u32 4294901760, %v448_v40 }
  0x37   : > { %2318 = vmatprep.mubr.f32.mxu1 %v566_v55  ;;  %2399 = vmatprep.mubr.f32.mxu0 %v584_v9  ;;  %3431 = vst [vmem:[#allocation8_spill] sm:$0xff] %v2913_v32  ;;  %v605_v45 = vsub.f32 %v2895_v19, %v604_v31  ;;  %v624_v46 = vand.u32 4294901760, %v2913_v32  ;;  %v2930_v48 = vsub.f32 %v445_v28, %v2915_v35  ;;  %v596_v50 = vand.u32 4294901760, %v595_v36 }
  0x38   : > { %v615_v54 = vsub.f32 %v2904_v26, %v614_v37  ;;  %v634_v55 = vand.u32 4294901760, %v2920_v39  ;;  %v451_v9 = vsel %vm407_vm0, %v2925_v41, 0  ;;  %v454_v30 = vsel %vm407_vm0, %v2937_v59, 0 }
  0x39   : > { %3432 = vst [vmem:[#allocation9_spill] sm:$0xff] %v2930_v48  ;;  %v606_v61 = vand.u32 4294901760, %v605_v45  ;;  %v625_v4 = vsub.f32 %v2913_v32, %v624_v46  ;;  %v644_v5 = vand.u32 4294901760, %v2930_v48  ;;  %v1549_v32 = vmul.f32 %v2769_v6, %v2769_v6 }
  0x3a   : > { %2319 = vmatmul.mubr.f32.gmra.mrb[4].mxu1 %v576_v14  ;;  %2400 = vmatmul.mubr.f32.gmra.mrb[6].mxu0 %v594_v24  ;;  %v2944_v14 = vsub.f32 %v448_v40, %v2934_v57  ;;  %v2946_v24 = vand.u32 4294901760, %v451_v9  ;;  %v616_v28 = vand.u32 4294901760, %v615_v54  ;;  %v635_v36 = vsub.f32 %v2920_v39, %v634_v55 }
  0x3b   : > { %2321 = vmatprep.mubr.f32.mxu1 %v586_v44  ;;  %2402 = vmatprep.mubr.f32.mxu0 %v604_v31  ;;  %v1563_v31 = vsel %vm407_vm0, %v2866_v53, 0.0  ;;  %v2957_v40 = vand.u32 4294901760, %v454_v30  ;;  %v626_v54 = vand.u32 4294901760, %v625_v4  ;;  %v645_v0 = vsub.f32 %v2930_v48, %v644_v5 }
  0x3c   : > { %v654_v44 = vand.u32 4294901760, %v2944_v14  ;;  %v2955_v45 = vsub.f32 %v451_v9, %v2946_v24  ;;  %v1548_v53 = vmul.f32 %v2759_v2, %v2759_v2  ;;  %1564 = vadd.xlane.f32.xlu0 %v1563_v31  ;;  %v1569_v9 = vsel %vm407_vm0, %v1549_v32, 0.0 }
  0x3d   : > { %v1551_v4 = vmul.f32 %v2781_v11, %v2781_v11  ;;  %v636_v6 = vand.u32 4294901760, %v635_v36  ;;  %1570 = vadd.xlane.f32.xlu1 %v1569_v9  ;;  %v1552_v11 = vmul.f32 %v2794_v15, %v2794_v15  ;;  %v1554_v15 = vmul.f32 %v2837_v38, %v2837_v38 }
  0x3e   : > { %2322 = vmatmul.mubr.f32.gmra.mrb[6].mxu1 %v596_v50  ;;  %2403 = vmatmul.mubr.f32.gmra.mrb[8].mxu0 %v614_v37  ;;  %v664_v37 = vand.u32 4294901760, %v2955_v45  ;;  %v2966_v50 = vsub.f32 %v454_v30, %v2957_v40  ;;  %v655_v2 = vsub.f32 %v2944_v14, %v654_v44  ;;  %v646_v30 = vand.u32 4294901760, %v645_v0 }
  0x3f   : > { %2324 = vmatprep.mubr.f32.mxu1 %v606_v61  ;;  %2405 = vmatprep.mubr.f32.mxu0 %v624_v46  ;;  %v1566_v61 = vsel %vm407_vm0, %v1548_v53, 0.0  ;;  %v1550_v46 = vmul.f32 %v2778_v10, %v2778_v10  ;;  %v1575_v10 = vsel %vm407_vm0, %v1551_v4, 0.0  ;;  %v1578_v36 = vsel %vm407_vm0, %v1552_v11, 0.0 }
  0x40   : > { %v674_v48 = vand.u32 4294901760, %v2966_v50  ;;  %v665_v32 = vsub.f32 %v2955_v45, %v664_v37  ;;  %1567 = vadd.xlane.f32.xlu0 %v1566_v61  ;;  %v1584_v53 = vsel %vm407_vm0, %v1554_v15, 0.0 }
  0x41   : > { %v1572_v31 = vsel %vm407_vm0, %v1550_v46, 0.0 }
  0x42   : > { %2325 = vmatmul.mubr.f32.gmra.mrb[8].mxu1 %v616_v28  ;;  %2406 = vmatmul.mubr.f32.gmra.mrb[10].mxu0 %v634_v55  ;;  %v1553_v55 = vmul.f32 %v2832_v34, %v2832_v34  ;;  %v656_v28 = vand.u32 4294901760, %v655_v2  ;;  %v666_v0 = vand.u32 4294901760, %v665_v32  ;;  %v3146_v32 = vld [vmem:[%s3084_s15 + $0x40] sm:$0xff] }
  0x43   : > { %2327 = vmatprep.mubr.f32.mxu1 %v626_v54  ;;  %2408 = vmatprep.mubr.f32.mxu0 %v644_v5  ;;  %v675_v5 = vsub.f32 %v2966_v50, %v674_v48 }
  0x44   : > { %1573 = vadd.xlane.f32.xlu1 %v1572_v31  ;;  %1576 = vadd.xlane.f32.xlu0 %v1575_v10  ;;  %v1581_v54 = vsel %vm407_vm0, %v1553_v55, 0.0 }
  0x45   : > { %v676_v34 = vand.u32 4294901760, %v675_v5 }
  0x46   : > { %2328 = vmatmul.mubr.f32.gmra.mrb[10].mxu1 %v636_v6  ;;  %2409 = vmatmul.mubr.f32.gmra.mrb[12].mxu0 %v654_v44  ;;  %v1555_v44 = vmul.f32 %v2844_v43, %v2844_v43  ;;  %v3141_v6 = vld [vmem:[%s3084_s15 + $0x38] sm:$0xff] }
  0x47   : > { %2330 = vmatprep.mubr.f32.mxu1 %v646_v30  ;;  %2411 = vmatprep.mubr.f32.mxu0 %v664_v37  ;;  %v1556_v37 = vmul.f32 %v2850_v47, %v2850_v47  ;;  %v1558_v47 = vmul.f32 %v2862_v52, %v2862_v52  ;;  %v1560_v52 = vmul.f32 %v2900_v23, %v2900_v23 }
  0x48   : > { %1579 = vadd.xlane.f32.xlu1 %v1578_v36  ;;  %1582 = vadd.xlane.f32.xlu0 %v1581_v54  ;;  %v1587_v38 = vsel %vm407_vm0, %v1555_v44, 0.0  ;;  %v1562_v23 = vmul.f32 %v2937_v59, %v2937_v59  ;;  %v3161_v54 = vld [vmem:[%s3084_s15 + $0x50] sm:$0xff] }
  0x49   : > { %v1590_v43 = vsel %vm407_vm0, %v1556_v37, 0.0 }
  0x4a   : > { %2331 = vmatmul.mubr.f32.gmra.mrb[12].mxu1 %v656_v28  ;;  %2412 = vmatmul.mubr.f32.gmra.mrb[14].mxu0 %v674_v48  ;;  %v1557_v48 = vmul.f32 %v2859_v51, %v2859_v51  ;;  %v1559_v51 = vmul.f32 %v2881_v62, %v2881_v62  ;;  %v1602_v62 = vsel %vm407_vm0, %v1560_v52, 0.0 }
  0x4b   : > { %2333 = vmatprep.mubr.f32.mxu1 %v666_v0  ;;  %2416 = vmatprep.mubr.f32.mxu0 %v2771_v7  ;;  %v3157_v0 = vld [vmem:[%s3084_s15 + $0x48] sm:$0xff] }
  0x4c   : > { %1585 = vadd.xlane.f32.xlu1 %v1584_v53  ;;  %1588 = vadd.xlane.f32.xlu0 %v1587_v38  ;;  %v1593_v9 = vsel %vm407_vm0, %v1557_v48, 0.0  ;;  %v1599_v61 = vsel %vm407_vm0, %v1559_v51, 0.0 }
  0x4e   : > { %2334 = vmatmul.mubr.f32.gmra.mrb[14].mxu1 %v676_v34  ;;  %2417 = vmatmul.mubr.f32.vlgmr.msra.gmra.mrb[0].mxu0 %v2773_v8 }
  0x4f   : > { %2338 = vmatprep.mubr.f32.mxu1 %v2771_v7  ;;  %2419 = vmatprep.mubr.f32.mxu0 %v2789_v13 }
  0x50   : > { %2441 = vmatpush3.msra.mxu0 %v2762_v3  ;;  %1591 = vadd.xlane.f32.xlu1 %v1590_v43  ;;  %v1596_v3 = vsel %vm407_vm0, %v1558_v47, 0.0  ;;  %v3173_v43 = vld [vmem:[%s3084_s15 + $0x58] sm:$0xff] }
  0x51   : > { %1594 = vadd.xlane.f32.xlu0 %v1593_v9  ;;  %v3177_v9 = vld [vmem:[%s3084_s15 + $0x60] sm:$0xff] }
  0x52   : > { %2339 = vmatmul.mubr.f32.vlgmr.msra.gmra.mrb[0].mxu1 %v2773_v8  ;;  %2420 = vmatmul.mubr.f32.gmra.mrb[2].mxu0 %v2804_v18 }
  0x53   : > { %2363 = vmatpush3.msra.mxu1 %v2787_v12  ;;  %2341 = vmatprep.mubr.f32.mxu1 %v2789_v13  ;;  %v1561_v12 = vmul.f32 %v2925_v41, %v2925_v41  ;;  %v1608_v41 = vsel %vm407_vm0, %v1562_v23, 0.0 }
  0x54   : > { %2422 = vmatprep.mubr.f32.mxu0 %v2812_v22  ;;  %1597 = vadd.xlane.f32.xlu1 %v1596_v3 }
  0x55   : > { %1600 = vadd.xlane.f32.xlu0 %v1599_v61  ;;  %v1605_v46 = vsel %vm407_vm0, %v1561_v12, 0.0 }
  0x56   : > { %2342 = vmatmul.mubr.f32.gmra.mrb[2].mxu1 %v2804_v18  ;;  %2423 = vmatmul.mubr.f32.gmra.mrb[4].mxu0 %v2829_v33 }
  0x57   : > { %2344 = vmatprep.mubr.f32.mxu1 %v2812_v22  ;;  %2425 = vmatprep.mubr.f32.mxu0 %v2854_v49 }
  0x58   : > { %1603 = vadd.xlane.f32.xlu1 %v1602_v62 }
  0x59   : > { %1606 = vadd.xlane.f32.xlu0 %v1605_v46  ;;  %v3189_v46 = vld [vmem:[%s3084_s15 + $0x68] sm:$0xff] }
  0x5a   : > { %2345 = vmatmul.mubr.f32.gmra.mrb[4].mxu1 %v2829_v33  ;;  %2426 = vmatmul.mubr.f32.gmra.mrb[6].mxu0 %v2868_v56 }
  0x5b   : > { %2347 = vmatprep.mubr.f32.mxu1 %v2854_v49  ;;  %2428 = vmatprep.mubr.f32.mxu0 %v2876_v60 }
  0x5c   : > { %1609 = vadd.xlane.f32.xlu1 %v1608_v41 }
  0x5e   : > { %2348 = vmatmul.mubr.f32.gmra.mrb[6].mxu1 %v2868_v56  ;;  %2429 = vmatmul.mubr.f32.gmra.mrb[8].mxu0 %v2886_v1 }
  0x5f   : > { %2350 = vmatprep.mubr.f32.mxu1 %v2876_v60  ;;  %2431 = vmatprep.mubr.f32.mxu0 %v2897_v20 }
  0x62   : > { %2351 = vmatmul.mubr.f32.gmra.mrb[8].mxu1 %v2886_v1  ;;  %2432 = vmatmul.mubr.f32.gmra.mrb[10].mxu0 %v2906_v27 }
  0x63   : > { %2353 = vmatprep.mubr.f32.mxu1 %v2897_v20  ;;  %2434 = vmatprep.mubr.f32.mxu0 %v2915_v35 }
  0x66   : > { %2354 = vmatmul.mubr.f32.gmra.mrb[10].mxu1 %v2906_v27  ;;  %2435 = vmatmul.mubr.f32.gmra.mrb[12].mxu0 %v2934_v57 }
  0x67   : > { %2356 = vmatprep.mubr.f32.mxu1 %v2915_v35  ;;  %2437 = vmatprep.mubr.f32.mxu0 %v2946_v24 }
  0x6a   : > { %2357 = vmatmul.mubr.f32.gmra.mrb[12].mxu1 %v2934_v57  ;;  %2438 = vmatmul.mubr.f32.gmra.mrb[14].mxu0 %v2957_v40 }
  0x6b   : > { %2359 = vmatprep.mubr.f32.mxu1 %v2946_v24  ;;  %2442 = vmatprep.mubr.f32.mxu0 %v2771_v7  ;;  %v3433_v7 = vld [vmem:[#allocation8_spill] sm:$0xff] }
  0x6e   : > { %2360 = vmatmul.mubr.f32.gmra.mrb[14].mxu1 %v2957_v40  ;;  %2443 = vmatmul.mubr.f32.vlgmr.msra.gmra.mrb[0].mxu0 %v2773_v8  ;;  %v3434_v8 = vld [vmem:[#allocation9_spill] sm:$0xff] }
  0x6f   : > { %2364 = vmatprep.mubr.f32.mxu1 %v2798_v16  ;;  %2445 = vmatprep.mubr.f32.mxu0 %v2789_v13  ;;  %v3087_v13 = vld [vmem:[%s3084_s15] sm:$0xff] }
  0x72   : > { %2365 = vmatmul.mubr.f32.vlgmr.msra.gmra.mrb[0].mxu1 %v2801_v17  ;;  %2446 = vmatmul.mubr.f32.gmra.mrb[2].mxu0 %v2804_v18  ;;  %v3094_v18 = vld [vmem:[%s3084_s15 + $0x10] sm:$0xff] }
  0x73   : > { %2367 = vmatprep.mubr.f32.mxu1 %v2810_v21  ;;  %2448 = vmatprep.mubr.f32.mxu0 %v2812_v22  ;;  %v3097_v21 = vld [vmem:[%s3084_s15 + $0x8] sm:$0xff] }
  0x76   : > { %2368 = vmatmul.mubr.f32.gmra.mrb[2].mxu1 %v2817_v25  ;;  %2449 = vmatmul.mubr.f32.gmra.mrb[4].mxu0 %v2829_v33 }
  0x77   : > { %2370 = vmatprep.mubr.f32.mxu1 %v2824_v29  ;;  %2451 = vmatprep.mubr.f32.mxu0 %v2854_v49  ;;  %v3109_v49 = vld [vmem:[%s3084_s15 + $0x18] sm:$0xff] }
  0x7a   : > { %2371 = vmatmul.mubr.f32.gmra.mrb[4].mxu1 %v2841_v42  ;;  %2452 = vmatmul.mubr.f32.gmra.mrb[6].mxu0 %v2868_v56  ;;  %v3112_v56 = vld [vmem:[%s3084_s15 + $0x20] sm:$0xff] }
  0x7b   : > { %2373 = vmatprep.mubr.f32.mxu1 %v2873_v58  ;;  %2454 = vmatprep.mubr.f32.mxu0 %v2876_v60 }
  0x7e   : > { %2374 = vmatmul.mubr.f32.gmra.mrb[6].mxu1 %v2884_v63  ;;  %2455 = vmatmul.mubr.f32.gmra.mrb[8].mxu0 %v2886_v1 }
  0x7f   : > { %2376 = vmatprep.mubr.f32.mxu1 %v2895_v19  ;;  %2457 = vmatprep.mubr.f32.mxu0 %v2897_v20 }
  0x82   : > { %2377 = vmatmul.mubr.f32.gmra.mrb[8].mxu1 %v2904_v26  ;;  %2458 = vmatmul.mubr.f32.gmra.mrb[10].mxu0 %v2906_v27 }
  0x83   : > { %2379 = vmatprep.mubr.f32.mxu1 %v3433_v7  ;;  %2460 = vmatprep.mubr.f32.mxu0 %v2915_v35  ;;  %v3125_v35 = vld [vmem:[%s3084_s15 + $0x28] sm:$0xff]  ;;  %v3193_v7 = vld [vmem:[%s3084_s15 + $0x70] sm:$0xff] }
  0x86   : > { %2380 = vmatmul.mubr.f32.gmra.mrb[10].mxu1 %v2920_v39  ;;  %2461 = vmatmul.mubr.f32.gmra.mrb[12].mxu0 %v2934_v57  ;;  %v3128_v39 = vld [vmem:[%s3084_s15 + $0x30] sm:$0xff] }
  0x87   : > { %2382 = vmatprep.mubr.f32.mxu1 %v3434_v8  ;;  %2463 = vmatprep.mubr.f32.mxu0 %v2946_v24 }
  0x8a   : > { %2383 = vmatmul.mubr.f32.gmra.mrb[12].mxu1 %v2944_v14  ;;  %2464 = vmatmul.mubr.f32.gmra.mrb[14].mxu0 %v2957_v40 }
  0x8b   : > { %2385 = vmatprep.mubr.f32.mxu1 %v2955_v45 }
  0x8e   : > { %2386 = vmatmul.mubr.f32.gmra.mrb[14].mxu1 %v2966_v50 }
  0xc9   : > { %v3089_v16 = vpop.xlane.xlu0 %1564 }
  0xca   : > { %v1979_v17 = vmul.f32 %v3089_v16, %v3087_v13  ;;  %v3099_v22 = vpop.xlane.xlu1 %1570 }
  0xcb   : > { %v1981_v33 = vmul.f32 %v3099_v22, %v3094_v18 }
  0xcc   : > { %v1995_v29 = vsel %vm1784_vm1, %v1979_v17, 0.0 }
  0xcd   : > { %v3101_v25 = vpop.xlane.xlu0 %1567  ;;  %v1998_v58 = vsel %vm1784_vm1, %v1981_v33, 0.0 }
  0xce   : > { %v1980_v42 = vmul.f32 %v3101_v25, %v3097_v21 }
  0xd0   : > { %v1996_v60 = vsel %vm1784_vm1, %v1980_v42, 0.0 }
  0xd1   : > { %v1997_v63 = vadd.f32 %v1996_v60, %v1995_v29  ;;  %v3116_v1 = vpop.xlane.xlu1 %1573  ;;  %v3118_v19 = vpop.xlane.xlu0 %1576 }
  0xd2   : > { %v1982_v20 = vmul.f32 %v3116_v1, %v3109_v49  ;;  %v1983_v26 = vmul.f32 %v3118_v19, %v3112_v56 }
  0xd3   : > { %v1999_v27 = vadd.f32 %v1998_v58, %v1997_v63  ;;  %v3205_v63 = vld [vmem:[%s3084_s15 + $0x78] sm:$0xff] }
  0xd4   : > { %v2000_v57 = vsel %vm1784_vm1, %v1982_v20, 0.0  ;;  %v2002_v59 = vsel %vm1784_vm1, %v1983_v26, 0.0 }
  0xd5   : > { %v2001_v14 = vadd.f32 %v2000_v57, %v1999_v27  ;;  %v3132_v24 = vpop.xlane.xlu1 %1579  ;;  %v3134_v45 = vpop.xlane.xlu0 %1582 }
  0xd6   : > { %v1984_v40 = vmul.f32 %v3132_v24, %v3125_v35  ;;  %v1985_v50 = vmul.f32 %v3134_v45, %v3128_v39 }
  0xd7   : > { %v2003_v4 = vadd.f32 %v2002_v59, %v2001_v14 }
  0xd8   : > { %v2004_v2 = vsel %vm1784_vm1, %v1984_v40, 0.0  ;;  %v2006_v30 = vsel %vm1784_vm1, %v1985_v50, 0.0 }
  0xd9   : > { %v2005_v31 = vadd.f32 %v2004_v2, %v2003_v4  ;;  %v3148_v10 = vpop.xlane.xlu1 %1585  ;;  %v3152_v55 = vpop.xlane.xlu0 %1588  ;;  %v3435_v4 = vld [vmem:[#allocation7_spill] sm:$0xff] }
  0xda   : > { %v1986_v11 = vmul.f32 %v3148_v10, %v3141_v6  ;;  %v1987_v5 = vmul.f32 %v3152_v55, %v3146_v32  ;;  %v1611_v2 = vmul.f32 %v3435_v4, %v3435_v4 }
  0xdb   : > { %v2007_v28 = vadd.f32 %v2006_v30, %v2005_v31 }
  0xdc   : > { %v2008_v36 = vsel %vm1784_vm1, %v1986_v11, 0.0  ;;  %v2010_v34 = vsel %vm1784_vm1, %v1987_v5, 0.0  ;;  %v1612_v30 = vrot.slane %v1611_v2, 4 }
  0xdd   : > { %v2009_v15 = vadd.f32 %v2008_v36, %v2007_v28  ;;  %v3164_v44 = vpop.xlane.xlu1 %1591 }
  0xde   : > { %v1988_v53 = vmul.f32 %v3164_v44, %v3157_v0  ;;  %v3168_v37 = vpop.xlane.xlu0 %1594  ;;  %v1613_v31 = vadd.f32 %v1612_v30, %v1611_v2 }
  0xdf   : > { %v2011_v38 = vadd.f32 %v2010_v34, %v2009_v15  ;;  %v1989_v48 = vmul.f32 %v3168_v37, %v3161_v54 }
  0xe0   : > { %v2012_v47 = vsel %vm1784_vm1, %v1988_v53, 0.0  ;;  %v1614_v11 = vrot.slane %v1613_v31, 2 }
  0xe1   : > { %v2013_v51 = vadd.f32 %v2012_v47, %v2011_v38  ;;  %v2014_v3 = vsel %vm1784_vm1, %v1989_v48, 0.0  ;;  %v3180_v52 = vpop.xlane.xlu1 %1597 }
  0xe2   : > { %v1990_v61 = vmul.f32 %v3180_v52, %v3173_v43  ;;  %v3184_v12 = vpop.xlane.xlu0 %1600  ;;  %v1615_v28 = vadd.f32 %v1614_v11, %v1613_v31 }
  0xe3   : > { %v2015_v62 = vadd.f32 %v2014_v3, %v2013_v51  ;;  %v1991_v23 = vmul.f32 %v3184_v12, %v3177_v9 }
  0xe4   : > { %v2016_v41 = vsel %vm1784_vm1, %v1990_v61, 0.0  ;;  %v1616_v5 = vrot.slane %v1615_v28, 1  ;;  %v1835_v61 = vlaneseq }
  0xe5   : > { %v2017_v8 = vadd.f32 %v2016_v41, %v2015_v62  ;;  %v2018_v17 = vsel %vm1784_vm1, %v1991_v23, 0.0  ;;  %v3196_v29 = vpop.xlane.xlu1 %1603 }
  0xe6   : > { %v1992_v33 = vmul.f32 %v3196_v29, %v3189_v46  ;;  %v3200_v42 = vpop.xlane.xlu0 %1606  ;;  %v3218_v15 = vadd.f32 %v1616_v5, %v1615_v28 }
  0xe7   : > { %v2019_v58 = vadd.f32 %v2018_v17, %v2017_v8  ;;  %v1993_v60 = vmul.f32 %v3200_v42, %v3193_v7 }
  0xe8   : > { %v2020_v20 = vsel %vm1784_vm1, %v1992_v33, 0.0  ;;  %v1619_v3 = vadd.f32 %v3218_v15, %v3101_v25  ;;  %v1618_v62 = vadd.f32 %v3218_v15, %v3089_v16  ;;  %v1620_v25 = vadd.f32 %v3218_v15, %v3099_v22 }
  0xe9   : > { %v2021_v26 = vadd.f32 %v2020_v20, %v2019_v58  ;;  %v2022_v27 = vsel %vm1784_vm1, %v1993_v60, 0.0  ;;  %v3209_v57 = vpop.xlane.xlu1 %1609  ;;  %v1622_v31 = vadd.f32 %v3218_v15, %v3118_v19  ;;  %v1623_v5 = vadd.f32 %v3218_v15, %v3132_v24 }
  0xea   : > { %v1994_v59 = vmul.f32 %v3209_v57, %v3205_v63 }
  0xeb   : > { %v2023_v14 = vadd.f32 %v2022_v27, %v2021_v26  ;;  %v1621_v27 = vadd.f32 %v3218_v15, %v3116_v1 }
  0xec   : > { %v2024_v40 = vsel %vm1784_vm1, %v1994_v59, 0.0  ;;  %v3226_v59 = vshrl.u32 %v1835_v61, 7 }
  0xed   : > { %v3214_v50 = vadd.f32 %v2024_v40, %v2023_v14 }
  0xee   : > { %v3235_v22 = vadd.s32 8, %v3226_v59 }
 0x141   : > { %v2444_v36 = vpop.f32.mrb[0].mxu0 }
 0x142   : > { %v1453_v34 = vpop.f32.mrb[1].mxu0 }
 0x145   : > { %v2366_v53 = vpop.f32.mrb[0].mxu1  ;;  %v2447_v38 = vpop.f32.mrb[2].mxu0 }
 0x146   : > { %v2466_v48 = vadd.f32 %v2444_v36, %v2366_v53  ;;  %v918_v47 = vpop.f32.mrb[1].mxu1  ;;  %v1465_v51 = vpop.f32.mrb[3].mxu0 }
 0x147   : > { %v2467_v23 = vadd.f32 %v1453_v34, %v918_v47 }
 0x148   : > { %v1635_v41 = vmul.f32 2.0, %v2466_v48 }
 0x149   : > { %v1634_v8 = vmul.f32 2.0, %v2467_v23  ;;  %v2369_v17 = vpop.f32.mrb[2].mxu1  ;;  %v2450_v33 = vpop.f32.mrb[4].mxu0  ;;  %v1624_v23 = vadd.f32 %v3218_v15, %v3134_v45 }
 0x14a   : > { %v1651_v58 = vsub.f32 %v1619_v3, %v1635_v41  ;;  %v2468_v60 = vadd.f32 %v2447_v38, %v2369_v17  ;;  %v932_v20 = vpop.f32.mrb[3].mxu1  ;;  %v1477_v26 = vpop.f32.mrb[5].mxu0  ;;  %v3237_v3 = vand.u32 127, %v1835_v61 }
 0x14b   : > { %v1650_v14 = vsub.f32 %v1618_v62, %v1634_v8  ;;  %v2469_v40 = vadd.f32 %v1465_v51, %v932_v20 }
 0x14c   : > { %v1667_v16 = vmax.f32 %v1651_v58, 0.0  ;;  %v1637_v4 = vmul.f32 2.0, %v2468_v60  ;;  %vm1855_vm2 = vcmp.eq.s32.totalorder %v3235_v22, %v3237_v3  ;;  %vm1854_vm3 = vcmp.eq.s32.totalorder %v3226_v59, %v3237_v3 }
 0x14d   : > { %v1666_v2 = vmax.f32 %v1650_v14, 0.0  ;;  %v1636_v30 = vmul.f32 2.0, %v2469_v40  ;;  %v2372_v11 = vpop.f32.mrb[4].mxu1  ;;  %v2453_v28 = vpop.f32.mrb[6].mxu0  ;;  %v1626_v40 = vadd.f32 %v3218_v15, %v3152_v55  ;;  %v1627_v55 = vadd.f32 %v3218_v15, %v3164_v44  ;;  %v3267_v44 = vld [vmem:[%s356_s21] ss:$0 sm:$0xff] }
 0x14e   : > { %v1683_v1 = vadd.f32 1.0, %v1667_v16  ;;  %v1653_v36 = vsub.f32 %v1621_v27, %v1637_v4  ;;  %v2470_v34 = vadd.f32 %v2450_v33, %v2372_v11  ;;  %v946_v53 = vpop.f32.mrb[5].mxu1  ;;  %v1489_v38 = vpop.f32.mrb[7].mxu0  ;;  %v1625_v33 = vadd.f32 %v3218_v15, %v3148_v10 }
 0x14f   : > { %v1682_v48 = vadd.f32 1.0, %v1666_v2  ;;  %v1652_v47 = vsub.f32 %v1620_v25, %v1636_v30  ;;  %v2471_v51 = vadd.f32 %v1477_v26, %v946_v53  ;;  %v3244_v27 = vadd.s32 24, %v3226_v59 }
 0x150   : > { %2587 = vrcp.f32 %v1683_v1  ;;  %v1669_v19 = vmax.f32 %v1653_v36, 0.0  ;;  %v1639_v62 = vmul.f32 2.0, %v2470_v34  ;;  %v3251_v4 = vadd.s32 16, %v3226_v59 }
 0x151   : > { %2589 = vrcp.f32 %v1682_v48  ;;  %v1668_v24 = vmax.f32 %v1652_v47, 0.0  ;;  %v1638_v41 = vmul.f32 2.0, %v2471_v51  ;;  %v2375_v8 = vpop.f32.mrb[6].mxu1  ;;  %v2456_v17 = vpop.f32.mrb[8].mxu0  ;;  %v1628_v53 = vadd.f32 %v3218_v15, %v3168_v37 }
 0x152   : > { %v1685_v58 = vadd.f32 1.0, %v1669_v19  ;;  %v1655_v60 = vsub.f32 %v1623_v5, %v1639_v62  ;;  %v2472_v20 = vadd.f32 %v2453_v28, %v2375_v8  ;;  %v960_v61 = vpop.f32.mrb[7].mxu1  ;;  %v1501_v26 = vpop.f32.mrb[9].mxu0  ;;  %v1629_v51 = vadd.f32 %v3218_v15, %v3180_v52 }
 0x153   : > { %v1684_v14 = vadd.f32 1.0, %v1668_v24  ;;  %v1654_v25 = vsub.f32 %v1622_v31, %v1638_v41  ;;  %v2473_v45 = vadd.f32 %v1489_v38, %v960_v61  ;;  %vm1857_vm4 = vcmp.eq.s32.totalorder %v3244_v27, %v3237_v3 }
 0x154   : > { %2591 = vrcp.f32 %v1685_v58  ;;  %v1671_v10 = vmax.f32 %v1655_v60, 0.0  ;;  %v1641_v16 = vmul.f32 2.0, %v2472_v20  ;;  %v3271_v37 = vadd.f32 %v3218_v15, %v3184_v12 }
 0x155   : > { %2593 = vrcp.f32 %v1684_v14  ;;  %v1670_v2 = vmax.f32 %v1654_v25, 0.0  ;;  %v1640_v30 = vmul.f32 2.0, %v2473_v45  ;;  %v2378_v31 = vpop.f32.mrb[8].mxu1  ;;  %v2459_v11 = vpop.f32.mrb[10].mxu0  ;;  %v1631_v52 = vadd.f32 %v3218_v15, %v3196_v29 }
 0x156   : > { %v1687_v28 = vadd.f32 1.0, %v1671_v10  ;;  %v1657_v5 = vsub.f32 %v1625_v33, %v1641_v16  ;;  %v2474_v1 = vadd.f32 %v2456_v17, %v2378_v31  ;;  %v974_v36 = vpop.f32.mrb[9].mxu1  ;;  %v1513_v34 = vpop.f32.mrb[11].mxu0  ;;  %vm1856_vm5 = vcmp.eq.s32.totalorder %v3251_v4, %v3237_v3 }
 0x157   : > { %v1686_v38 = vadd.f32 1.0, %v1670_v2  ;;  %v1656_v48 = vsub.f32 %v1624_v23, %v1640_v30  ;;  %v2475_v47 = vadd.f32 %v1501_v26, %v974_v36  ;;  %v3277_v26 = vadd.f32 %v3218_v15, %v3200_v42 }
 0x158   : > { %2595 = vrcp.f32 %v1687_v28  ;;  %v1673_v19 = vmax.f32 %v1657_v5, 0.0  ;;  %v1643_v62 = vmul.f32 2.0, %v2474_v1  ;;  %v1633_v42 = vadd.f32 %v3218_v15, %v3209_v57 }
 0x159   : > { %2597 = vrcp.f32 %v1686_v38  ;;  %v1672_v24 = vmax.f32 %v1656_v48, 0.0  ;;  %v1642_v41 = vmul.f32 2.0, %v2475_v47  ;;  %v2381_v23 = vpop.f32.mrb[10].mxu1  ;;  %v2462_v8 = vpop.f32.mrb[12].mxu0 }
 0x15a   : > { %v2588_v17 = vpop.eup %2587  ;;  %v1689_v33 = vadd.f32 1.0, %v1673_v19  ;;  %v1659_v58 = vsub.f32 %v1627_v55, %v1643_v62  ;;  %v2476_v60 = vadd.f32 %v2459_v11, %v2381_v23  ;;  %v988_v20 = vpop.f32.mrb[11].mxu1 }
 0x15b   : > { %v1525_v61 = vpop.f32.mrb[13].mxu0  ;;  %v2590_v12 = vpop.eup %2589  ;;  %v1688_v14 = vadd.f32 1.0, %v1672_v24  ;;  %v1658_v25 = vsub.f32 %v1626_v40, %v1642_v41  ;;  %v2477_v45 = vadd.f32 %v1513_v34, %v988_v20  ;;  %v1721_v10 = vmul.f32 %v2588_v17, %v3267_v44 }
 0x15c   : > { %2599 = vrcp.f32 %v1689_v33  ;;  %v1675_v16 = vmax.f32 %v1659_v58, 0.0  ;;  %v1645_v2 = vmul.f32 2.0, %v2476_v60  ;;  %v1720_v29 = vmul.f32 %v2590_v12, %v3267_v44 }
 0x15d   : > { %2601 = vrcp.f32 %v1688_v14  ;;  %v1674_v30 = vmax.f32 %v1658_v25, 0.0  ;;  %v1644_v31 = vmul.f32 2.0, %v2477_v45  ;;  %v2465_v11 = vpop.f32.mrb[14].mxu0  ;;  %1738 = vadd.xlane.f32.xlu1 %v1721_v10  ;;  %v2384_v55 = vpop.f32.mrb[12].mxu1  ;;  %v1871_v38 = vsel %vm1855_vm2, %v1721_v10, 0.0 }
 0x15e   : > { %v2592_v40 = vpop.eup %2591  ;;  %v1691_v28 = vadd.f32 1.0, %v1675_v16  ;;  %v1661_v5 = vsub.f32 %v1629_v51, %v1645_v2  ;;  %v2478_v1 = vadd.f32 %v2462_v8, %v2384_v55  ;;  %v1537_v36 = vpop.f32.mrb[15].mxu0  ;;  %1736 = vadd.xlane.f32.xlu0 %v1720_v29  ;;  %v1870_v22 = vsel %vm1854_vm3, %v1720_v29, 0.0 }
 0x15f   : > { %v1002_v34 = vpop.f32.mrb[13].mxu1  ;;  %v2594_v48 = vpop.eup %2593  ;;  %v1690_v47 = vadd.f32 1.0, %v1674_v30  ;;  %v1660_v19 = vsub.f32 %v1628_v53, %v1644_v31  ;;  %v1723_v57 = vmul.f32 %v2592_v40, %v3267_v44  ;;  %v1841_v30 = vadd.s32 40, %v3226_v59 }
 0x160   : > { %v2479_v62 = vadd.f32 %v1525_v61, %v1002_v34  ;;  %2603 = vrcp.f32 %v1691_v28  ;;  %v1677_v15 = vmax.f32 %v1661_v5, 0.0  ;;  %v1647_v24 = vmul.f32 2.0, %v2478_v1 }
 0x161   : > { %v1722_v41 = vmul.f32 %v2594_v48, %v3267_v44  ;;  %2605 = vrcp.f32 %v1690_v47  ;;  %v1676_v51 = vmax.f32 %v1660_v19, 0.0  ;;  %1888 = vadd.xlane.f32.xlu1 %v1871_v38  ;;  %v2387_v8 = vpop.f32.mrb[14].mxu1  ;;  %v1873_v20 = vsel %vm1857_vm4, %v1723_v57, 0.0 }
 0x162   : > { %v1646_v23 = vmul.f32 2.0, %v2479_v62  ;;  %v2596_v17 = vpop.eup %2595  ;;  %v1693_v33 = vadd.f32 1.0, %v1677_v15  ;;  %v1663_v53 = vsub.f32 %v1631_v52, %v1647_v24  ;;  %v2480_v58 = vadd.f32 %v2465_v11, %v2387_v8  ;;  %1886 = vadd.xlane.f32.xlu0 %v1870_v22  ;;  %v1016_v60 = vpop.f32.mrb[15].mxu1 }
 0x163   : > { %v2598_v61 = vpop.eup %2597  ;;  %v1692_v12 = vadd.f32 1.0, %v1676_v51  ;;  %v2481_v25 = vadd.f32 %v1537_v36, %v1016_v60  ;;  %v1725_v45 = vmul.f32 %v2596_v17, %v3267_v44  ;;  %v1872_v1 = vsel %vm1856_vm5, %v1722_v41, 0.0 }
 0x164   : > { %v1662_v14 = vsub.f32 %v3271_v37, %v1646_v23  ;;  %2607 = vrcp.f32 %v1693_v33  ;;  %v1679_v10 = vmax.f32 %v1663_v53, 0.0  ;;  %v1649_v16 = vmul.f32 2.0, %v2480_v58 }
 0x165   : > { %v1724_v2 = vmul.f32 %v2598_v61, %v3267_v44  ;;  %2609 = vrcp.f32 %v1692_v12  ;;  %v1648_v29 = vmul.f32 2.0, %v2481_v25  ;;  %1892 = vadd.xlane.f32.xlu1 %v1873_v20  ;;  %vm1859_vm6 = vcmp.eq.s32.totalorder %v1841_v30, %v3237_v3 }
 0x166   : > { %v1678_v52 = vmax.f32 %v1662_v14, 0.0  ;;  %v2600_v27 = vpop.eup %2599  ;;  %v1695_v31 = vadd.f32 1.0, %v1679_v10  ;;  %v1665_v11 = vsub.f32 %v1633_v42, %v1649_v16  ;;  %1742 = vadd.xlane.f32.xlu0 %v1723_v57  ;;  %v1840_v42 = vadd.s32 32, %v3226_v59 }
 0x167   : > { %v2602_v55 = vpop.eup %2601  ;;  %v1664_v40 = vsub.f32 %v3277_v26, %v1648_v29  ;;  %v1727_v28 = vmul.f32 %v2600_v27, %v3267_v44  ;;  %v1875_v62 = vsel %vm1859_vm6, %v1725_v45, 0.0  ;;  %v1843_v57 = vadd.s32 56, %v3226_v59 }
 0x168   : > { %v1694_v37 = vadd.f32 1.0, %v1678_v52  ;;  %2611 = vrcp.f32 %v1695_v31  ;;  %v1681_v5 = vmax.f32 %v1665_v11, 0.0  ;;  %v1726_v36 = vmul.f32 %v2602_v55, %v3267_v44 }
 0x169   : > { %v1680_v34 = vmax.f32 %v1664_v40, 0.0  ;;  %1890 = vadd.xlane.f32.xlu1 %v1872_v1  ;;  %vm1858_vm7 = vcmp.eq.s32.totalorder %v1840_v42, %v3237_v3  ;;  %vm1861_vm8 = vcmp.eq.s32.totalorder %v1843_v57, %v3237_v3  ;;  %v1842_v8 = vadd.s32 48, %v3226_v59 }
 0x16a   : > { %2613 = vrcp.f32 %v1694_v37  ;;  %v2604_v38 = vpop.eup %2603  ;;  %v1697_v48 = vadd.f32 1.0, %v1681_v5  ;;  %1740 = vadd.xlane.f32.xlu0 %v1722_v41  ;;  %v1874_v41 = vsel %vm1858_vm7, %v1724_v2, 0.0  ;;  %v1877_v53 = vsel %vm1861_vm8, %v1727_v28, 0.0 }
 0x16b   : > { %v2606_v26 = vpop.eup %2605  ;;  %v1696_v47 = vadd.f32 1.0, %v1680_v34  ;;  %v1729_v19 = vmul.f32 %v2604_v38, %v3267_v44  ;;  %vm1860_vm9 = vcmp.eq.s32.totalorder %v1842_v8, %v3237_v3  ;;  %v1845_v60 = vadd.s32 72, %v3226_v59 }
 0x16c   : > { %2615 = vrcp.f32 %v1697_v48  ;;  %v1728_v4 = vmul.f32 %v2606_v26, %v3267_v44  ;;  %v1876_v14 = vsel %vm1860_vm9, %v1726_v36, 0.0  ;;  %v1847_v16 = vadd.s32 88, %v3226_v59 }
 0x16d   : > { %2617 = vrcp.f32 %v1696_v47  ;;  %1896 = vadd.xlane.f32.xlu1 %v1875_v62  ;;  %vm1863_vm10 = vcmp.eq.s32.totalorder %v1845_v60, %v3237_v3  ;;  %v1846_v52 = vadd.s32 80, %v3226_v59  ;;  %v1849_v29 = vadd.s32 104, %v3226_v59 }
 0x16e   : > { %v2608_v15 = vpop.eup %2607  ;;  %1746 = vadd.xlane.f32.xlu0 %v1725_v45  ;;  %v1844_v45 = vadd.s32 64, %v3226_v59  ;;  %v1879_v10 = vsel %vm1863_vm10, %v1729_v19, 0.0  ;;  %vm1865_vm12 = vcmp.eq.s32.totalorder %v1847_v16, %v3237_v3  ;;  %v1848_v27 = vadd.s32 96, %v3226_v59 }
 0x16f   : > { %v2610_v24 = vpop.eup %2609  ;;  %v1731_v51 = vmul.f32 %v2608_v15, %v3267_v44  ;;  %vm1864_vm13 = vcmp.eq.s32.totalorder %v1846_v52, %v3237_v3  ;;  %vm1867_vm14 = vcmp.eq.s32.totalorder %v1849_v29, %v3237_v3  ;;  %v1850_v11 = vadd.s32 112, %v3226_v59 }
 0x170   : > { %v1730_v23 = vmul.f32 %v2610_v24, %v3267_v44  ;;  %vm1862_vm11 = vcmp.eq.s32.totalorder %v1844_v45, %v3237_v3  ;;  %vm1866_vm15 = vcmp.eq.s32.totalorder %v1848_v27, %v3237_v3  ;;  %v1851_v37 = vadd.s32 120, %v3226_v59 }
 0x171   : > { %1894 = vadd.xlane.f32.xlu1 %v1874_v41  ;;  %vm1868_vm0 = vcmp.eq.s32.totalorder %v1850_v11, %v3237_v3  ;;  %vm2056_vm3 = vcmp.eq.s32.totalorder %v3237_v3, 1  ;;  %vm2054_vm4 = vcmp.eq.s32.totalorder %v3237_v3, 0 }
 0x172   : > { %v2612_v22 = vpop.eup %2611  ;;  %1744 = vadd.xlane.f32.xlu0 %v1724_v2  ;;  %v1878_v2 = vsel %vm1862_vm11, %v1728_v4, 0.0  ;;  %v1880_v30 = vsel %vm1864_vm13, %v1730_v23, 0.0  ;;  %vm1869_vm2 = vcmp.eq.s32.totalorder %v1851_v37, %v3237_v3 }
 0x173   : > { %v1733_v33 = vmul.f32 %v2612_v22, %v3267_v44 }
 0x174   : > { %v2614_v17 = vpop.eup %2613 }
 0x175   : > { %v1732_v58 = vmul.f32 %v2614_v17, %v3267_v44  ;;  %1900 = vadd.xlane.f32.xlu1 %v1877_v53  ;;  %v1883_v31 = vsel %vm1867_vm14, %v1733_v33, 0.0 }
 0x176   : > { %v2616_v20 = vpop.eup %2615  ;;  %1750 = vadd.xlane.f32.xlu0 %v1727_v28 }
 0x177   : > { %v2618_v61 = vpop.eup %2617  ;;  %v1735_v12 = vmul.f32 %v2616_v20, %v3267_v44  ;;  %v1882_v55 = vsel %vm1866_vm15, %v1732_v58, 0.0 }
 0x178   : > { %v1734_v25 = vmul.f32 %v2618_v61, %v3267_v44  ;;  %v1881_v44 = vsel %vm1865_vm12, %v1731_v51, 0.0 }
 0x179   : > { %1898 = vadd.xlane.f32.xlu1 %v1876_v14  ;;  %v1885_v28 = vsel %vm1869_vm2, %v1735_v12, 0.0 }
 0x17a   : > { %1748 = vadd.xlane.f32.xlu0 %v1726_v36  ;;  %v1884_v40 = vsel %vm1868_vm0, %v1734_v25, 0.0 }
 0x17d   : > { %1904 = vadd.xlane.f32.xlu1 %v1879_v10 }
 0x17e   : > { %1754 = vadd.xlane.f32.xlu0 %v1729_v19 }
 0x181   : > { %1902 = vadd.xlane.f32.xlu1 %v1878_v2 }
 0x182   : > { %1752 = vadd.xlane.f32.xlu0 %v1728_v4 }
 0x185   : > { %1908 = vadd.xlane.f32.xlu1 %v1881_v44 }
 0x186   : > { %1758 = vadd.xlane.f32.xlu0 %v1731_v51 }
 0x189   : > { %1906 = vadd.xlane.f32.xlu1 %v1880_v30 }
 0x18a   : > { %1756 = vadd.xlane.f32.xlu0 %v1730_v23 }
 0x18d   : > { %1912 = vadd.xlane.f32.xlu1 %v1883_v31 }
 0x18e   : > { %1762 = vadd.xlane.f32.xlu0 %v1733_v33 }
 0x191   : > { %1910 = vadd.xlane.f32.xlu1 %v1882_v55 }
 0x192   : > { %1760 = vadd.xlane.f32.xlu0 %v1732_v58 }
 0x195   : > { %1914 = vadd.xlane.f32.xlu1 %v1884_v40 }
 0x196   : > { %1764 = vadd.xlane.f32.xlu0 %v1734_v25 }
 0x199   : > { %1916 = vadd.xlane.f32.xlu1 %v1885_v28 }
 0x19a   : > { %1766 = vadd.xlane.f32.xlu0 %v1735_v12 }
 0x1ea   : > { %v1739_v5 = vpop.xlane.xlu1 %1738 }
 0x1eb   : > { %v1737_v1 = vpop.xlane.xlu0 %1736  ;;  %v1769_v57 = vmul.f32 %v1739_v5, %v3097_v21 }
 0x1ec   : > { %v1768_v15 = vmul.f32 %v1737_v1, %v3087_v13 }
 0x1ed   : > { %v1786_v17 = vsel %vm1784_vm1, %v1769_v57, 0.0 }
 0x1ee   : > { %v1889_v36 = vpop.xlane.xlu1 %1888  ;;  %v1785_v33 = vsel %vm1784_vm1, %v1768_v15, 0.0 }
 0x1ef   : > { %v1887_v34 = vpop.xlane.xlu0 %1886  ;;  %v1919_v19 = vmul.f32 %v1889_v36, %v3097_v21  ;;  %v1787_v60 = vadd.f32 %v1786_v17, %v1785_v33 }
 0x1f0   : > { %v1918_v62 = vmul.f32 %v1887_v34, %v3087_v13 }
 0x1f1   : > { %v1935_v23 = vsel %vm1784_vm1, %v1919_v19, 0.0 }
 0x1f2   : > { %v1893_v42 = vpop.xlane.xlu1 %1892  ;;  %v1934_v8 = vsel %vm1784_vm1, %v1918_v62, 0.0 }
 0x1f3   : > { %v1743_v38 = vpop.xlane.xlu0 %1742  ;;  %v1936_v58 = vadd.f32 %v1935_v23, %v1934_v8  ;;  %v1921_v20 = vmul.f32 %v1893_v42, %v3109_v49 }
 0x1f4   : > { %v1771_v12 = vmul.f32 %v1743_v38, %v3109_v49 }
 0x1f5   : > { %v1939_v16 = vsel %vm1784_vm1, %v1921_v20, 0.0 }
 0x1f6   : > { %v1891_v48 = vpop.xlane.xlu1 %1890  ;;  %v1790_v44 = vsel %vm1784_vm1, %v1771_v12, 0.0 }
 0x1f7   : > { %v1741_v26 = vpop.xlane.xlu0 %1740  ;;  %v1920_v24 = vmul.f32 %v1891_v48, %v3094_v18 }
 0x1f8   : > { %v1770_v51 = vmul.f32 %v1741_v26, %v3094_v18 }
 0x1f9   : > { %v1937_v53 = vsel %vm1784_vm1, %v1920_v24, 0.0 }
 0x1fa   : > { %v1897_v47 = vpop.xlane.xlu1 %1896  ;;  %v1788_v21 = vsel %vm1784_vm1, %v1770_v51, 0.0  ;;  %v1938_v14 = vadd.f32 %v1937_v53, %v1936_v58 }
 0x1fb   : > { %v1747_v4 = vpop.xlane.xlu0 %1746  ;;  %v1789_v45 = vadd.f32 %v1788_v21, %v1787_v60  ;;  %v1923_v27 = vmul.f32 %v1897_v47, %v3125_v35 }
 0x1fc   : > { %v1940_v29 = vadd.f32 %v1939_v16, %v1938_v14  ;;  %v1773_v11 = vmul.f32 %v1747_v4, %v3125_v35 }
 0x1fd   : > { %v1791_v31 = vadd.f32 %v1790_v44, %v1789_v45  ;;  %v1943_v5 = vsel %vm1784_vm1, %v1923_v27, 0.0 }
 0x1fe   : > { %v1895_v41 = vpop.xlane.xlu1 %1894  ;;  %v1794_v36 = vsel %vm1784_vm1, %v1773_v11, 0.0 }
 0x1ff   : > { %v1745_v22 = vpop.xlane.xlu0 %1744  ;;  %v1922_v18 = vmul.f32 %v1895_v41, %v3112_v56 }
 0x200   : > { %v1772_v25 = vmul.f32 %v1745_v22, %v3112_v56 }
 0x201   : > { %v1941_v2 = vsel %vm1784_vm1, %v1922_v18, 0.0 }
 0x202   : > { %v1901_v13 = vpop.xlane.xlu1 %1900  ;;  %v1792_v30 = vsel %vm1784_vm1, %v1772_v25, 0.0  ;;  %v1942_v56 = vadd.f32 %v1941_v2, %v1940_v29 }
 0x203   : > { %v1751_v61 = vpop.xlane.xlu0 %1750  ;;  %v1793_v40 = vadd.f32 %v1792_v30, %v1791_v31  ;;  %v1925_v48 = vmul.f32 %v1901_v13, %v3141_v6 }
 0x204   : > { %v1944_v34 = vadd.f32 %v1943_v5, %v1942_v56 }
 0x205   : > { %v1795_v26 = vadd.f32 %v1794_v36, %v1793_v40  ;;  %v1947_v15 = vsel %vm1784_vm1, %v1925_v48, 0.0 }
 0x206   : > { %v1899_v10 = vpop.xlane.xlu1 %1898 }
 0x207   : > { %v1749_v52 = vpop.xlane.xlu0 %1748  ;;  %v1924_v49 = vmul.f32 %v1899_v10, %v3128_v39 }
 0x208   : > { %v1774_v55 = vmul.f32 %v1749_v52, %v3128_v39  ;;  %v1775_v39 = vmul.f32 %v1751_v61, %v3141_v6 }
 0x209   : > { %v1945_v1 = vsel %vm1784_vm1, %v1924_v49, 0.0 }
 0x20a   : > { %v1905_v37 = vpop.xlane.xlu1 %1904  ;;  %v1796_v42 = vsel %vm1784_vm1, %v1774_v55, 0.0  ;;  %v1946_v19 = vadd.f32 %v1945_v1, %v1944_v34  ;;  %v1798_v41 = vsel %vm1784_vm1, %v1775_v39, 0.0 }
 0x20b   : > { %v1755_v28 = vpop.xlane.xlu0 %1754  ;;  %v1797_v4 = vadd.f32 %v1796_v42, %v1795_v26  ;;  %v1927_v22 = vmul.f32 %v1905_v37, %v3157_v0 }
 0x20c   : > { %v1948_v23 = vadd.f32 %v1947_v15, %v1946_v19  ;;  %v1777_v6 = vmul.f32 %v1755_v28, %v3157_v0 }
 0x20d   : > { %v1799_v17 = vadd.f32 %v1798_v41, %v1797_v4  ;;  %v1951_v60 = vsel %vm1784_vm1, %v1927_v22, 0.0 }
 0x20e   : > { %v1903_v38 = vpop.xlane.xlu1 %1902  ;;  %v1802_v18 = vsel %vm1784_vm1, %v1777_v6, 0.0 }
 0x20f   : > { %v1926_v35 = vmul.f32 %v1903_v38, %v3146_v32  ;;  %v1753_v47 = vpop.xlane.xlu0 %1752 }
 0x210   : > { %v1776_v62 = vmul.f32 %v1753_v47, %v3146_v32 }
 0x211   : > { %v1949_v24 = vsel %vm1784_vm1, %v1926_v35, 0.0 }
 0x212   : > { %v1909_v57 = vpop.xlane.xlu1 %1908  ;;  %v1800_v8 = vsel %vm1784_vm1, %v1776_v62, 0.0  ;;  %v1950_v33 = vadd.f32 %v1949_v24, %v1948_v23 }
 0x213   : > { %v1759_v51 = vpop.xlane.xlu0 %1758  ;;  %v1801_v32 = vadd.f32 %v1800_v8, %v1799_v17  ;;  %v1929_v0 = vmul.f32 %v1909_v57, %v3173_v43 }
 0x214   : > { %v1952_v61 = vadd.f32 %v1951_v60, %v1950_v33  ;;  %v1779_v10 = vmul.f32 %v1759_v51, %v3173_v43 }
 0x215   : > { %v1803_v25 = vadd.f32 %v1802_v18, %v1801_v32 }
 0x216   : > { %v1907_v53 = vpop.xlane.xlu1 %1906  ;;  %v1806_v27 = vsel %vm1784_vm1, %v1779_v10, 0.0  ;;  %v2048_v10 = vstv %s2046_s26 }
 0x217   : > { %v1928_v58 = vmul.f32 %v1907_v53, %v3161_v54  ;;  %v1757_v21 = vpop.xlane.xlu0 %1756 }
 0x218   : > { %v1778_v13 = vmul.f32 %v1757_v21, %v3161_v54  ;;  %v1955_v54 = vsel %vm1784_vm1, %v1929_v0, 0.0 }
 0x219   : > { %v1953_v20 = vsel %vm1784_vm1, %v1928_v58, 0.0 }
 0x21a   : > { %v1804_v12 = vsel %vm1784_vm1, %v1778_v13, 0.0  ;;  %v1913_v14 = vpop.xlane.xlu1 %1912  ;;  %v1954_v16 = vadd.f32 %v1953_v20, %v1952_v61 }
 0x21b   : > { %v1763_v45 = vpop.xlane.xlu0 %1762  ;;  %v1805_v2 = vadd.f32 %v1804_v12, %v1803_v25  ;;  %v1931_v44 = vmul.f32 %v1913_v14, %v3189_v46 }
 0x21c   : > { %v1781_v31 = vmul.f32 %v1763_v45, %v3189_v46  ;;  %v1956_v49 = vadd.f32 %v1955_v54, %v1954_v16  ;;  %v2051_v45 = vstv %s2203_s24 }
 0x21d   : > { %v1807_v43 = vadd.f32 %v1806_v27, %v1805_v2  ;;  %v1959_v28 = vsel %vm1784_vm1, %v1931_v44, 0.0 }
 0x21e   : > { %v1911_v52 = vpop.xlane.xlu1 %1910  ;;  %v1810_v34 = vsel %vm1784_vm1, %v1781_v31, 0.0 }
 0x21f   : > { %v1930_v29 = vmul.f32 %v1911_v52, %v3177_v9  ;;  %v1761_v30 = vpop.xlane.xlu0 %1760 }
 0x220   : > { %v1780_v11 = vmul.f32 %v1761_v30, %v3177_v9 }
 0x221   : > { %v1957_v56 = vsel %vm1784_vm1, %v1930_v29, 0.0 }
 0x222   : > { %v1958_v55 = vadd.f32 %v1957_v56, %v1956_v49  ;;  %v1808_v37 = vsel %vm1784_vm1, %v1780_v11, 0.0  ;;  %v1915_v40 = vpop.xlane.xlu1 %1914 }
 0x223   : > { %v1809_v5 = vadd.f32 %v1808_v37, %v1807_v43  ;;  %v1932_v1 = vmul.f32 %v1915_v40, %v3193_v7  ;;  %v1765_v36 = vpop.xlane.xlu0 %1764 }
 0x224   : > { %v1782_v46 = vmul.f32 %v1765_v36, %v3193_v7  ;;  %v1960_v42 = vadd.f32 %v1959_v28, %v1958_v55 }
 0x225   : > { %v1961_v9 = vsel %vm1784_vm1, %v1932_v1, 0.0  ;;  %v1811_v38 = vadd.f32 %v1810_v34, %v1809_v5 }
 0x226   : > { %v1812_v48 = vsel %vm1784_vm1, %v1782_v46, 0.0  ;;  %v1917_v26 = vpop.xlane.xlu1 %1916  ;;  %v1962_v19 = vadd.f32 %v1961_v9, %v1960_v42 }
 0x227   : > { %v1933_v35 = vmul.f32 %v1917_v26, %v3205_v63  ;;  %v1767_v47 = vpop.xlane.xlu0 %1766  ;;  %v1813_v4 = vadd.f32 %v1812_v48, %v1811_v38 }
 0x228   : > { %v1783_v39 = vmul.f32 %v1767_v47, %v3205_v63 }
 0x229   : > { %v1963_v62 = vsel %vm1784_vm1, %v1933_v35, 0.0 }
 0x22a   : > { %v1964_v57 = vadd.f32 %v1963_v62, %v1962_v19  ;;  %v1814_v15 = vsel %vm1784_vm1, %v1783_v39, 0.0  ;;  %vm2053_vm1 = vcmp.eq.s32.totalorder %v3226_v59, 0 }
 0x22b   : > { %v1815_v7 = vadd.f32 %v1814_v15, %v1813_v4  ;;  %vm2057_vm5 = vmand %vm2053_vm1, %vm2056_vm3 }
 0x22c   : > { %1965 = vadd.xlane.f32.xlu1 %v1964_v57  ;;  %vm2055_vm6 = vmand %vm2053_vm1, %vm2054_vm4 }
 0x22d   : > { %1816 = vadd.xlane.f32.xlu0 %v1815_v7 }
 0x231   : > { %2026 = vadd.xlane.f32.xlu0 %v3214_v50 }
 0x2b9   : > { %v1966_v24 = vpop.xlane.xlu1 %1965 }
 0x2ba   : > { %v1967_v51 = vrot.slane %v1966_v24, 4  ;;  %v1817_v41 = vpop.xlane.xlu0 %1816 }
 0x2bb   : > { %v1818_v23 = vrot.slane %v1817_v41, 4 }
 0x2bc   : > { %v1968_v8 = vadd.f32 %v1967_v51, %v1966_v24 }
 0x2bd   : > { %v1819_v22 = vadd.f32 %v1818_v23, %v1817_v41 }
 0x2be   : > { %v1969_v17 = vrot.slane %v1968_v8, 2  ;;  %v2027_v63 = vpop.xlane.xlu0 %2026 }
 0x2bf   : > { %v1820_v6 = vrot.slane %v1819_v22, 2  ;;  %v2028_v33 = vrot.slane %v2027_v63, 4 }
 0x2c0   : > { %v1970_v53 = vadd.f32 %v1969_v17, %v1968_v8 }
 0x2c1   : > { %v2029_v32 = vadd.f32 %v2028_v33, %v2027_v63  ;;  %v1821_v58 = vadd.f32 %v1820_v6, %v1819_v22 }
 0x2c2   : > { %v1971_v21 = vrot.slane %v1970_v53, 1 }
 0x2c3   : > { %v2030_v13 = vrot.slane %v2029_v32, 2  ;;  %v1822_v60 = vrot.slane %v1821_v58, 1 }
 0x2c4   : > { %v1972_v20 = vadd.f32 %v1971_v21, %v1970_v53 }
 0x2c5   : > { %v2031_v18 = vadd.f32 %v2030_v13, %v2029_v32  ;;  %v1823_v61 = vadd.f32 %v1822_v60, %v1821_v58 }
 0x2c7   : > { %2546 = vpush %v1823_v61  ;;  %v2032_v50 = vrot.slane %v2031_v18, 1 }
 0x2c8   : > { %2548 = vpush %v1972_v20 }
 0x2c9   : > { %v2033_v12 = vadd.f32 %v2032_v50, %v2031_v18 }
 0x2cb   : > { %2550 = vpush %v2033_v12 }
 0x2f8   : > { %s2547_s25 = spop %2546 }
 0x2f9   : > { %v1829_v14 = vstv %s2547_s25  ;;  %s2549_s27 = spop %2548 }
 0x2fa   : > { %v1975_v0 = vstv %s2549_s27 }
 0x2fb   : > { %v1976_v25 = vsub.f32 %v1829_v14, %v1975_v0 }
 0x2fc   : > { %s2551_s28 = spop %2550 }
 0x2fd   : > { %v2035_v16 = vstv %s2551_s28  ;;  %v2049_v52 = vmul.f32 %v2048_v10, %v1976_v25 }
 0x2fe   : > { %v2052_v2 = vmul.f32 %v2051_v45, %v2035_v16 }
 0x300   : > { %v2058_v54 = vsel %vm2057_vm5, %v2052_v2, 0.0 }
 0x301   : > { %v2059_v59 = vsel %vm2055_vm6, %v2049_v52, %v2058_v54 }
 0x302   : > { %2060 = vst [vmem:[%s360_s7] sm:$0xff] %v2059_v59 }
 0x303 PF: > { %s16_s20 = sadd.s32 1, %s2660_s20   ;;  %s3436_s18 = smov %s2656_s19 }
 0x304   : > { %p13_p2 = scmp.ge.s32.totalorder %s16_s20, 4   ;;  %s3437_s19 = smov %s3439_s22 }
 0x306   :  { %15 = sbr.rel (!%p13_p2) target bundleno = 2 (0x2), region = 100 }
 0x30d   :  { %2080 = vsyncpa [#allocation5], 1 }
 0x30e   :  { %2082 = vsyncpa [#allocation5 + $0x1], 1 }

</bundles_post_ra>
